<compile_context>
chip_gen: v5e
topology: v5e:2x2
jax: 0.10.0
libtpu: 0.0.40
codegen_flags: <defaults>
</compile_context>

<pallas_src>
import functools

import jax
import jax.numpy as jnp
from jax.experimental import pallas as pl
from jax.experimental.pallas import tpu as pltpu


def _round_up(v, m):
    return (v + m - 1) // m * m


def _textcnn_kernel(group_sizes, *refs):
    """refs = (x, [w_g, b_g, wt_g] per size-group, linear_bias, out).

    w_g : [s*Hp, NFp]   fused conv weight for all branches of this filter size
                        (row block r*Hp:(r+1)*Hp is the weight for time-shift r)
    b_g : [1, NFp]      fused conv bias
    wt_g: [NFp, Cp]     rows of Linear weight^T matching this group's branches
    """
    ng = len(group_sizes)
    x_ref = refs[0]
    bias_ref = refs[1 + 3 * ng]
    out_ref = refs[2 + 3 * ng]

    TB, L, Hp = x_ref.shape
    acc = jnp.zeros(out_ref.shape, jnp.float32)          # [TB, Cp]

    for gi, s in enumerate(group_sizes):
        w_ref = refs[1 + 3 * gi]
        b_ref = refs[2 + 3 * gi]
        wt_ref = refs[3 + 3 * gi]
        T = L - s + 1

        # Unrolled shift-accumulate conv -- no im2col temporary.
        conv = None
        for r in range(s):
            part = jax.lax.dot_general(
                x_ref[:, r:r + T, :], w_ref[r * Hp:(r + 1) * Hp, :],
                dimension_numbers=(((2,), (0,)), ((), ())),
                preferred_element_type=jnp.float32)       # [TB, T, NFp] f32 acc
            conv = part if conv is None else conv + part

        # Bias + ReLU hoisted out of the time axis (equivalent math).
        pooled = jnp.maximum(jnp.max(conv, axis=1) + b_ref[...], 0.0)   # [TB, NFp]

        # Fold the final Linear per group (replaces concat + one big dot).
        acc = acc + jnp.dot(pooled, wt_ref[...], preferred_element_type=jnp.float32)

    out_ref[...] = (acc + bias_ref[...]).astype(out_ref.dtype)


def textcnn_forward(x, conv_ws, conv_bs, weight, bias, filter_sizes, num_filters,
                    conv_dtype=jnp.bfloat16):
    """x: [B, L, H]; conv_ws[i]: [F, s_i, H]; conv_bs[i]: [F];
    weight: [C, n*F]; bias: [C]. Returns [B, C] (f32)."""
    B, L, H = x.shape
    C = weight.shape[0]
    if max(filter_sizes) > L:
        raise ValueError("filter size larger than encode_layer is not supported")

    H_pad = _round_up(H, 128)                            # lane-dense K (no-op when H=768)
    C_pad = _round_up(C, 128)                            # lane-dense output store

    # ---- group branches by filter size (fully fused for the default [2,2,2]) ----
    groups = []
    for i, s in enumerate(filter_sizes):
        for g in groups:
            if g[0] == s:
                g[1].append(i)
                break
        else:
            groups.append((s, [i]))

    wt_full = weight.astype(jnp.float32).T               # [n*F, C]
    group_sizes, group_args, group_meta = [], [], []
    for s, idxs in groups:
        nf = len(idxs) * num_filters
        nf_pad = _round_up(nf, 128)

        # Fused conv weight: Wg[r*Hp + h, p*F + f] = conv_ws[idxs[p]][f, r, h]
        w = jnp.stack([conv_ws[j] for j in idxs], axis=0)            # [g, F, s, H]
        w = jnp.transpose(w, (2, 3, 0, 1)).reshape(s, H, nf)         # [s, H, g*F]
        w = jnp.pad(w, ((0, 0), (0, H_pad - H), (0, nf_pad - nf)))
        w = w.reshape(s * H_pad, nf_pad).astype(conv_dtype)

        b = jnp.concatenate([conv_bs[j] for j in idxs]).astype(jnp.float32)
        b = jnp.pad(b, (0, nf_pad - nf)).reshape(1, nf_pad)

        wt = jnp.concatenate(
            [wt_full[j * num_filters:(j + 1) * num_filters] for j in idxs], axis=0)
        wt = jnp.pad(wt, ((0, nf_pad - nf), (0, C_pad - C)))         # [NFp, Cp]

        group_sizes.append(s)
        group_args += [w, b, wt]
        group_meta.append((s, nf_pad))

    bias2 = jnp.pad(bias.astype(jnp.float32), (0, C_pad - C)).reshape(1, C_pad)

    # ---- batch-tile selection from an explicit VMEM budget ----
    try:
        vmem_cap = int(getattr(pltpu.get_tpu_info(), "vmem_capacity_bytes"))
    except Exception:
        vmem_cap = 64 << 20                              # conservative fallback
    vmem_limit = min(96 << 20, (vmem_cap * 3) // 4)      # 96 MiB on v5e/v6e, ~48 MiB on v7x

    conv_isz = jnp.dtype(conv_dtype).itemsize
    fixed_bytes = sum(int(a.size) * a.dtype.itemsize for a in group_args) + C_pad * 4
    per_row = (2 * L * H_pad * conv_isz                                  # x double buffer
               + sum((L - s + 1) * nfp * 4 + nfp * 4 for s, nfp in group_meta)  # conv + pooled
               + C_pad * 4                                               # acc
               + 2 * C_pad * 4)                                          # out double buffer
    budget = int(vmem_limit * 0.8) - 2 * fixed_bytes - (4 << 20)         # headroom
    tb_vmem = max(8, (budget // max(per_row, 1)) // 8 * 8)

    # Work target: >= ~2048 (batch*time) matmul rows per grid step.
    t_min = L - max(filter_sizes) + 1
    tb_work = _round_up(max(8, -(-2048 // max(t_min, 1))), 8)

    tb = min(tb_work, tb_vmem)
    B8 = _round_up(B, 8)
    if B8 >= 16:                                          # keep grid >= 2 (two TCs on v7x)
        tb = min(tb, max(8, (B8 // 2) // 8 * 8))
    tb = max(8, min(tb, B8))
    B_pad = _round_up(B, tb)

    # ---- input staging: cast to conv dtype; skip pad when not needed ----
    x_c = x.astype(conv_dtype)
    if (B_pad != B) or (H_pad != H):
        x_p = jnp.pad(x_c, ((0, B_pad - B), (0, 0), (0, H_pad - H)))
    else:
        x_p = x_c

    # ---- cost estimate ----
    flops = 0
    for s, nfp in group_meta:
        T = L - s + 1
        flops += 2 * B_pad * T * (s * H_pad) * nfp + 2 * B_pad * nfp * C_pad
    bytes_accessed = int(
        x_p.size * x_p.dtype.itemsize
        + sum(int(a.size) * a.dtype.itemsize for a in group_args)
        + bias2.size * bias2.dtype.itemsize
        + B_pad * C_pad * 4)
    cost = pl.CostEstimate(flops=int(flops), transcendentals=0,
                           bytes_accessed=bytes_accessed)

    kernel = functools.partial(_textcnn_kernel, tuple(group_sizes))
    x_spec = pl.BlockSpec((tb, L, H_pad), lambda b: (b, 0, 0))
    out_spec = pl.BlockSpec((tb, C_pad), lambda b: (b, 0))
    cparams = pltpu.CompilerParams(
        dimension_semantics=("parallel",),                # split batch grid across TCs
        vmem_limit_bytes=int(vmem_limit))

    def _call(single_buffer_weights):
        in_specs = [x_spec]
        for a in list(group_args) + [bias2]:
            if single_buffer_weights:
                spec = pl.BlockSpec(a.shape, lambda b: (0, 0),
                                    pipeline_mode=pl.Buffered(1))
            else:
                spec = pl.BlockSpec(a.shape, lambda b: (0, 0))
            in_specs.append(spec)
        return pl.pallas_call(
            kernel,
            out_shape=jax.ShapeDtypeStruct((B_pad, C_pad), jnp.float32),
            grid=(B_pad // tb,),
            in_specs=in_specs,
            out_specs=out_spec,
            compiler_params=cparams,
            cost_estimate=cost,
        )(x_p, *group_args, bias2)

    try:
        out = _call(True)          # single-buffer the constant-index weight inputs
    except Exception:
        out = _call(False)         # fallback if pipeline_mode/Buffered(1) unsupported

    return out[:B, :C]


def textcnn_ref(x, conv_ws, conv_bs, weight, bias, filter_sizes):
    """Pure-JAX f32 reference mirroring the PyTorch forward."""
    pooled = []
    for i, s in enumerate(filter_sizes):
        w, b = conv_ws[i], conv_bs[i]
        T = x.shape[1] - s + 1
        acc = jnp.zeros((x.shape[0], T, w.shape[0]), jnp.float32)
        for r in range(s):
            acc = acc + jnp.einsum('bth,fh->btf', x[:, r:r + T, :], w[:, r, :])
        h = jax.nn.relu(acc + b[None, None, :])
        pooled.append(jnp.max(h, axis=1))
    h_pool = jnp.concatenate(pooled, axis=-1)
    return h_pool @ weight.T + bias


if __name__ == "__main__":
    # Small shapes consistent with the module's forward:
    # input to forward() is [batch, encode_layer, hidden_size]
    batch = 2
    encode_layer = 8
    hidden_size = 32
    num_filters = 3
    filter_sizes = [2, 2, 2]
    num_classes = 4
    num_filter_total = num_filters * len(filter_sizes)

    key = jax.random.PRNGKey(0)
    keys = jax.random.split(key, 2 + 2 * len(filter_sizes) + 1)

    x = jax.random.normal(keys[0], (batch, encode_layer, hidden_size), jnp.float32)

    # Deterministic parameter init (shapes from the module's __init__).
    conv_ws, conv_bs = [], []
    for i, s in enumerate(filter_sizes):
        fan_in = 1 * s * hidden_size
        bound = 1.0 / jnp.sqrt(fan_in)
        conv_ws.append(jax.random.uniform(
            keys[1 + 2 * i], (num_filters, s, hidden_size), jnp.float32,
            minval=-bound, maxval=bound))
        conv_bs.append(jax.random.uniform(
            keys[2 + 2 * i], (num_filters,), jnp.float32,
            minval=-bound, maxval=bound))

    w_bound = 1.0 / jnp.sqrt(num_filter_total)
    weight = jax.random.uniform(
        keys[-1], (num_classes, num_filter_total), jnp.float32,
        minval=-w_bound, maxval=w_bound)          # nn.Linear(num_filter_total, C, bias=False)
    bias = jnp.ones((num_classes,), jnp.float32)  # nn.Parameter(torch.ones([C]))

    out = textcnn_forward(x, conv_ws, conv_bs, weight, bias, filter_sizes, num_filters)
    out = jax.block_until_ready(out)

    ref = textcnn_ref(x, conv_ws, conv_bs, weight, bias, filter_sizes)
    assert out.shape == (batch, num_classes)
    # bf16-fed conv (f32 accumulation) -> tolerance sized for bf16 input rounding.
    assert jnp.allclose(out, ref, rtol=2e-2, atol=2e-2), (out, ref)

    print("KERNEL_OK")
</pallas_src>

<mosaic_0001>
module attributes {stable_mosaic.version = 11 : i64} {
  func.func @_textcnn_kernel(%arg0: i32, %arg1: memref<8x8x128xbf16, #tpu.memory_space<vmem>>, %arg2: memref<256x128xbf16, #tpu.memory_space<vmem>>, %arg3: memref<1x128xf32, #tpu.memory_space<vmem>>, %arg4: memref<128x128xf32, #tpu.memory_space<vmem>>, %arg5: memref<1x128xf32, #tpu.memory_space<vmem>>, %arg6: memref<8x128xf32, #tpu.memory_space<vmem>>) attributes {dimension_semantics = [#tpu.dimension_semantics<parallel>], iteration_bounds = array<i64: 1>, scalar_prefetch = 0 : i64, scratch_operands = 0 : i64, tpu.core_type = #tpu.core_type<tc>, window_params = [{transform_indices = @transform_0, window_bounds = array<i64: 8, 8, 128>}, {pipeline_mode = #tpu.pipeline_mode<synchronous>, transform_indices = @transform_1, window_bounds = array<i64: 256, 128>}, {pipeline_mode = #tpu.pipeline_mode<synchronous>, transform_indices = @transform_2, window_bounds = array<i64: 1, 128>}, {pipeline_mode = #tpu.pipeline_mode<synchronous>, transform_indices = @transform_3, window_bounds = array<i64: 128, 128>}, {pipeline_mode = #tpu.pipeline_mode<synchronous>, transform_indices = @transform_4, window_bounds = array<i64: 1, 128>}, {transform_indices = @transform_5, window_bounds = array<i64: 8, 128>}]} {
    %cst = arith.constant 0.000000e+00 : f32
    %0 = vector.broadcast %cst : f32 to vector<8x128xf32>
    %c0 = arith.constant 0 : index
    %c0_0 = arith.constant 0 : index
    %c0_1 = arith.constant 0 : index
    %1 = vector.load %arg1[%c0, %c0_0, %c0_1] : memref<8x8x128xbf16, #tpu.memory_space<vmem>>, vector<8x7x128xbf16>
    %c0_2 = arith.constant 0 : index
    %c0_3 = arith.constant 0 : index
    %2 = vector.load %arg2[%c0_2, %c0_3] : memref<256x128xbf16, #tpu.memory_space<vmem>>, vector<128x128xbf16>
    %cst_4 = arith.constant dense<0.000000e+00> : vector<8x7x128xf32>
    %3 = tpu.matmul %1, %2, %cst_4 {dimension_numbers = #tpu.dot_dimension_numbers<[2], [0], [0, 1], [1], [0, 0, 0, 1, 1, 1], [], []>} : vector<8x7x128xbf16>, vector<128x128xbf16>, vector<8x7x128xf32> -> vector<8x7x128xf32>
    %c0_5 = arith.constant 0 : index
    %c1 = arith.constant 1 : index
    %c0_6 = arith.constant 0 : index
    %4 = vector.load %arg1[%c0_5, %c1, %c0_6] : memref<8x8x128xbf16, #tpu.memory_space<vmem>>, vector<8x7x128xbf16>
    %c128 = arith.constant 128 : index
    %c0_7 = arith.constant 0 : index
    %5 = vector.load %arg2[%c128, %c0_7] : memref<256x128xbf16, #tpu.memory_space<vmem>>, vector<128x128xbf16>
    %cst_8 = arith.constant dense<0.000000e+00> : vector<8x7x128xf32>
    %6 = tpu.matmul %4, %5, %cst_8 {dimension_numbers = #tpu.dot_dimension_numbers<[2], [0], [0, 1], [1], [0, 0, 0, 1, 1, 1], [], []>} : vector<8x7x128xbf16>, vector<128x128xbf16>, vector<8x7x128xf32> -> vector<8x7x128xf32>
    %7 = arith.addf %3, %6 : vector<8x7x128xf32>
    %cst_9 = arith.constant dense<0xFF800000> : vector<8x128xf32>
    %8 = vector.multi_reduction <maximumf>, %7, %cst_9 [1] : vector<8x7x128xf32> to vector<8x128xf32>
    %c0_10 = arith.constant 0 : index
    %c0_11 = arith.constant 0 : index
    %9 = vector.load %arg3[%c0_10, %c0_11] : memref<1x128xf32, #tpu.memory_space<vmem>>, vector<1x128xf32>
    %10 = vector.broadcast %9 : vector<1x128xf32> to vector<8x128xf32>
    %11 = arith.addf %8, %10 : vector<8x128xf32>
    %cst_12 = arith.constant 0.000000e+00 : f32
    %12 = vector.broadcast %cst_12 : f32 to vector<8x128xf32>
    %13 = arith.maximumf %11, %12 : vector<8x128xf32>
    %c0_13 = arith.constant 0 : index
    %c0_14 = arith.constant 0 : index
    %14 = vector.load %arg4[%c0_13, %c0_14] : memref<128x128xf32, #tpu.memory_space<vmem>>, vector<128x128xf32>
    %cst_15 = arith.constant dense<0.000000e+00> : vector<8x128xf32>
    %15 = tpu.matmul %13, %14, %cst_15 {dimension_numbers = #tpu.dot_dimension_numbers<[1], [0], [0], [1], [0, 0, 1, 1], [], []>} : vector<8x128xf32>, vector<128x128xf32>, vector<8x128xf32> -> vector<8x128xf32>
    %16 = arith.addf %0, %15 : vector<8x128xf32>
    %c0_16 = arith.constant 0 : index
    %c0_17 = arith.constant 0 : index
    %17 = vector.load %arg5[%c0_16, %c0_17] : memref<1x128xf32, #tpu.memory_space<vmem>>, vector<1x128xf32>
    %18 = vector.broadcast %17 : vector<1x128xf32> to vector<8x128xf32>
    %19 = arith.addf %16, %18 : vector<8x128xf32>
    %c0_18 = arith.constant 0 : index
    %c0_19 = arith.constant 0 : index
    %20 = vector.load %arg6[%c0_18, %c0_19] : memref<8x128xf32, #tpu.memory_space<vmem>>, vector<8x128xf32>
    tpu.vector_store %arg6[%c0_18, %c0_19], %19 {strides = array<i32>} : memref<8x128xf32, #tpu.memory_space<vmem>>, vector<8x128xf32>,
    return
  }
  func.func @transform_0(%arg0: i32) -> (i32, i32, i32) {
    %c0_i32 = arith.constant 0 : i32
    %c0_i32_0 = arith.constant 0 : i32
    %c0_i32_1 = arith.constant 0 : i32
    return %arg0, %c0_i32, %c0_i32_0 : i32, i32, i32
  }
  func.func @transform_1(%arg0: i32) -> (i32, i32) {
    %c0_i32 = arith.constant 0 : i32
    %c0_i32_0 = arith.constant 0 : i32
    %c0_i32_1 = arith.constant 0 : i32
    return %c0_i32, %c0_i32_0 : i32, i32
  }
  func.func @transform_2(%arg0: i32) -> (i32, i32) {
    %c0_i32 = arith.constant 0 : i32
    %c0_i32_0 = arith.constant 0 : i32
    %c0_i32_1 = arith.constant 0 : i32
    return %c0_i32, %c0_i32_0 : i32, i32
  }
  func.func @transform_3(%arg0: i32) -> (i32, i32) {
    %c0_i32 = arith.constant 0 : i32
    %c0_i32_0 = arith.constant 0 : i32
    %c0_i32_1 = arith.constant 0 : i32
    return %c0_i32, %c0_i32_0 : i32, i32
  }
  func.func @transform_4(%arg0: i32) -> (i32, i32) {
    %c0_i32 = arith.constant 0 : i32
    %c0_i32_0 = arith.constant 0 : i32
    %c0_i32_1 = arith.constant 0 : i32
    return %c0_i32, %c0_i32_0 : i32, i32
  }
  func.func @transform_5(%arg0: i32) -> (i32, i32) {
    %c0_i32 = arith.constant 0 : i32
    %c0_i32_0 = arith.constant 0 : i32
    return %arg0, %c0_i32 : i32, i32
  }
}

module attributes {stable_mosaic.version = 11 : i64} {
  func.func @_textcnn_kernel(%arg0: i32, %arg1: memref<8x8x128xbf16, #tpu.memory_space<vmem>>, %arg2: memref<256x128xbf16, #tpu.memory_space<vmem>>, %arg3: memref<1x128xf32, #tpu.memory_space<vmem>>, %arg4: memref<128x128xf32, #tpu.memory_space<vmem>>, %arg5: memref<1x128xf32, #tpu.memory_space<vmem>>, %arg6: memref<8x128xf32, #tpu.memory_space<vmem>>) attributes {dimension_semantics = [#tpu.dimension_semantics<parallel>], iteration_bounds = array<i64: 1>, scalar_prefetch = 0 : i64, scratch_operands = 0 : i64, tpu.core_type = #tpu.core_type<tc>, window_params = [{transform_indices = @transform_0, window_bounds = array<i64: 8, 8, 128>}, {pipeline_mode = #tpu.pipeline_mode<synchronous>, transform_indices = @transform_1, window_bounds = array<i64: 256, 128>}, {pipeline_mode = #tpu.pipeline_mode<synchronous>, transform_indices = @transform_2, window_bounds = array<i64: 1, 128>}, {pipeline_mode = #tpu.pipeline_mode<synchronous>, transform_indices = @transform_3, window_bounds = array<i64: 128, 128>}, {pipeline_mode = #tpu.pipeline_mode<synchronous>, transform_indices = @transform_4, window_bounds = array<i64: 1, 128>}, {transform_indices = @transform_5, window_bounds = array<i64: 8, 128>}]} {
    %cst = arith.constant 0.000000e+00 : f32
    %0 = vector.broadcast %cst : f32 to vector<8x128xf32>
    %c0 = arith.constant 0 : index
    %c0_0 = arith.constant 0 : index
    %c0_1 = arith.constant 0 : index
    %1 = vector.load %arg1[%c0, %c0_0, %c0_1] : memref<8x8x128xbf16, #tpu.memory_space<vmem>>, vector<8x7x128xbf16>
    %c0_2 = arith.constant 0 : index
    %c0_3 = arith.constant 0 : index
    %2 = vector.load %arg2[%c0_2, %c0_3] : memref<256x128xbf16, #tpu.memory_space<vmem>>, vector<128x128xbf16>
    %cst_4 = arith.constant dense<0.000000e+00> : vector<8x7x128xf32>
    %3 = tpu.matmul %1, %2, %cst_4 {dimension_numbers = #tpu.dot_dimension_numbers<[2], [0], [0, 1], [1], [0, 0, 0, 1, 1, 1], [], []>} : vector<8x7x128xbf16>, vector<128x128xbf16>, vector<8x7x128xf32> -> vector<8x7x128xf32>
    %c0_5 = arith.constant 0 : index
    %c1 = arith.constant 1 : index
    %c0_6 = arith.constant 0 : index
    %4 = vector.load %arg1[%c0_5, %c1, %c0_6] : memref<8x8x128xbf16, #tpu.memory_space<vmem>>, vector<8x7x128xbf16>
    %c128 = arith.constant 128 : index
    %c0_7 = arith.constant 0 : index
    %5 = vector.load %arg2[%c128, %c0_7] : memref<256x128xbf16, #tpu.memory_space<vmem>>, vector<128x128xbf16>
    %cst_8 = arith.constant dense<0.000000e+00> : vector<8x7x128xf32>
    %6 = tpu.matmul %4, %5, %cst_8 {dimension_numbers = #tpu.dot_dimension_numbers<[2], [0], [0, 1], [1], [0, 0, 0, 1, 1, 1], [], []>} : vector<8x7x128xbf16>, vector<128x128xbf16>, vector<8x7x128xf32> -> vector<8x7x128xf32>
    %7 = arith.addf %3, %6 : vector<8x7x128xf32>
    %cst_9 = arith.constant dense<0xFF800000> : vector<8x128xf32>
    %8 = vector.multi_reduction <maximumf>, %7, %cst_9 [1] : vector<8x7x128xf32> to vector<8x128xf32>
    %c0_10 = arith.constant 0 : index
    %c0_11 = arith.constant 0 : index
    %9 = vector.load %arg3[%c0_10, %c0_11] : memref<1x128xf32, #tpu.memory_space<vmem>>, vector<1x128xf32>
    %10 = vector.broadcast %9 : vector<1x128xf32> to vector<8x128xf32>
    %11 = arith.addf %8, %10 : vector<8x128xf32>
    %cst_12 = arith.constant 0.000000e+00 : f32
    %12 = vector.broadcast %cst_12 : f32 to vector<8x128xf32>
    %13 = arith.maximumf %11, %12 : vector<8x128xf32>
    %c0_13 = arith.constant 0 : index
    %c0_14 = arith.constant 0 : index
    %14 = vector.load %arg4[%c0_13, %c0_14] : memref<128x128xf32, #tpu.memory_space<vmem>>, vector<128x128xf32>
    %cst_15 = arith.constant dense<0.000000e+00> : vector<8x128xf32>
    %15 = tpu.matmul %13, %14, %cst_15 {dimension_numbers = #tpu.dot_dimension_numbers<[1], [0], [0], [1], [0, 0, 1, 1], [], []>} : vector<8x128xf32>, vector<128x128xf32>, vector<8x128xf32> -> vector<8x128xf32>
    %16 = arith.addf %0, %15 : vector<8x128xf32>
    %c0_16 = arith.constant 0 : index
    %c0_17 = arith.constant 0 : index
    %17 = vector.load %arg5[%c0_16, %c0_17] : memref<1x128xf32, #tpu.memory_space<vmem>>, vector<1x128xf32>
    %18 = vector.broadcast %17 : vector<1x128xf32> to vector<8x128xf32>
    %19 = arith.addf %16, %18 : vector<8x128xf32>
    %c0_18 = arith.constant 0 : index
    %c0_19 = arith.constant 0 : index
    %20 = vector.load %arg6[%c0_18, %c0_19] : memref<8x128xf32, #tpu.memory_space<vmem>>, vector<8x128xf32>
    tpu.vector_store %arg6[%c0_18, %c0_19], %19 {strides = array<i32>} : memref<8x128xf32, #tpu.memory_space<vmem>>, vector<8x128xf32>,
    return
  }
  func.func @transform_0(%arg0: i32) -> (i32, i32, i32) {
    %c0_i32 = arith.constant 0 : i32
    %c0_i32_0 = arith.constant 0 : i32
    %c0_i32_1 = arith.constant 0 : i32
    return %arg0, %c0_i32, %c0_i32_0 : i32, i32, i32
  }
  func.func @transform_1(%arg0: i32) -> (i32, i32) {
    %c0_i32 = arith.constant 0 : i32
    %c0_i32_0 = arith.constant 0 : i32
    %c0_i32_1 = arith.constant 0 : i32
    return %c0_i32, %c0_i32_0 : i32, i32
  }
  func.func @transform_2(%arg0: i32) -> (i32, i32) {
    %c0_i32 = arith.constant 0 : i32
    %c0_i32_0 = arith.constant 0 : i32
    %c0_i32_1 = arith.constant 0 : i32
    return %c0_i32, %c0_i32_0 : i32, i32
  }
  func.func @transform_3(%arg0: i32) -> (i32, i32) {
    %c0_i32 = arith.constant 0 : i32
    %c0_i32_0 = arith.constant 0 : i32
    %c0_i32_1 = arith.constant 0 : i32
    return %c0_i32, %c0_i32_0 : i32, i32
  }
  func.func @transform_4(%arg0: i32) -> (i32, i32) {
    %c0_i32 = arith.constant 0 : i32
    %c0_i32_0 = arith.constant 0 : i32
    %c0_i32_1 = arith.constant 0 : i32
    return %c0_i32, %c0_i32_0 : i32, i32
  }
  func.func @transform_5(%arg0: i32) -> (i32, i32) {
    %c0_i32 = arith.constant 0 : i32
    %c0_i32_0 = arith.constant 0 : i32
    return %arg0, %c0_i32 : i32, i32
  }
}

</mosaic_0001>

<bundles_post_ra>
// kernel: tpu_custom_call.1
= control target key start
LH: loop header
LB: loop body
LE: loop exit
PB: predicated region body
PF: predicated region fallthrough
CT: control target
= control target key end

     0   :  { %10 = vsyncpa [#allocation3], 0  ;;  %s1483_s0 = inlined_call_operand.hbm [shape: bf16[8,8,128], index: 0, kind: input, shape index: {}]   ;;  %s1484_s1 = inlined_call_operand.hbm [shape: bf16[256,128], index: 1, kind: input, shape index: {}]   ;;  %s1485_s2 = inlined_call_operand.vmem [shape: f32[1,128], index: 2, kind: input, shape index: {}]   ;;  %s1486_s3 = inlined_call_operand.hbm [shape: f32[128,128], index: 3, kind: input, shape index: {}]   ;;  %s1487_s4 = inlined_call_operand.vmem [shape: f32[1,128], index: 4, kind: input, shape index: {}]   ;;  %s1488_s5 = inlined_call_operand.hbm [shape: f32[8,128], index: 5, kind: output, shape index: {}]  }
   0x1   :  { %11 = vsyncpa [#allocation6], 0 }
   0x2   :  { %12 = vsyncpa [#allocation4], 0  ;;  %s30_s20 = sshll.u32 %s1484_s1, 4  ;;  %s1179_s21 = smov [#allocation5]   ;;  %s31_s20 = int_to_ptr.hbm [resolvable:$true] %s30_s20 }
   0x3   :  { %s32_s22 = sshll.u32 %s1179_s21, 4  ;;  %s17_s25 = sshll.u32 %s1483_s0, 4  ;;  %s33_s22 = int_to_ptr.vmem [resolvable:$true] %s32_s22  ;;  %s18_s25 = int_to_ptr.hbm [resolvable:$true] %s17_s25 }
   0x4   :  { %s1180_s26 = smov 64   ;;  %s1181_s27 = smov 4  }
   0x5   :  { %38 = dma.hbm_to_vmem [thread:$0]  %s31_s20, 2048, %s33_s22, [#allocation6], %s1180_s26, %s1180_s26, %s1181_s27  }
   0x6   :  { %s1182_s28 = smov [#allocation2]   ;;  %s45_s7 = sshll.u32 %s1486_s3, 4  ;;  %s46_s7 = int_to_ptr.hbm [resolvable:$true] %s45_s7 }
   0x7   :  { %s19_s29 = sshll.u32 %s1182_s28, 4  ;;  %s1183_s1 = smov [#allocation7]   ;;  %s20_s29 = int_to_ptr.vmem [resolvable:$true] %s19_s29 }
   0x8   :  { %25 = dma.hbm_to_vmem [thread:$0]  %s18_s25, 512, %s20_s29, [#allocation3], %s1180_s26, %s1180_s26, %s1181_s27  }
   0x9   :  { %s47_s8 = sshll.u32 %s1183_s1, 4  ;;  %s1184_s9 = smov 128   ;;  %s48_s8 = int_to_ptr.vmem [resolvable:$true] %s47_s8 }
   0xa   :  { %s1185_s10 = smov 8  }
   0xb   :  { %53 = dma.hbm_to_vmem [thread:$0]  %s46_s7, 2048, %s48_s8, [#allocation6], %s1184_s9, %s1184_s9, %s1185_s10  }
   0xc   :  { %1173 = dma.done.wait [#allocation3], 512  }
   0xd   :  { %1174 = vsyncadd [#allocation3], 4294966784 }
   0xe   :  { %1175 = dma.done.wait [#allocation6], 4096  }
   0xf   :  { %1176 = vsyncadd [#allocation6], 4294963200  ;;  %v1050_v0 = vld [vmem:[#allocation5 + $0x78] sm:$0xff]  ;;  %v1049_v2 = vld [vmem:[#allocation5 + $0x70] sm:$0xff]  ;;  %vm124_vm0 = vcmask 1040384   ;;  %vm129_vm1 = vcmask 1041409  }
  0x10   :  { %v1042_v1 = vld [vmem:[#allocation5 + $0x38] sm:$0xff]  ;;  %435 = vmatpush.bf16.msra.mxu0 %v1050_v0  ;;  %1051 = vmatpush.bf16.msra.mxu3 %v1050_v0  ;;  %v1041_v3 = vld [vmem:[#allocation5 + $0x30] sm:$0xff]  ;;  %v68_v4 = vld [vmem:[#allocation2] sm:$0xf]  ;;  %vm133_vm2 = vcmask 1042434   ;;  %vm137_vm3 = vcmask 1043459  }
  0x11   :  { %618 = vmatpush.bf16.msra.mxu1 %v1042_v1  ;;  %1059 = vmatpush.bf16.msra.mxu2 %v1042_v1  ;;  %v69_v5 = vld [vmem:[#allocation2 + $0x4] sm:$0xf]  ;;  %v1226_v6 = vld [vmem:[#allocation2 + $0x8] sm:$0xf]  ;;  %v116_v7 = vrot.slane %v68_v4, 3  ;;  %v1046_v40 = vld [vmem:[#allocation5 + $0x58] sm:$0xff] }
  0x12   :  { %v1048_v8 = vld [vmem:[#allocation5 + $0x68] sm:$0xff]  ;;  %v117_v9 = vrot.slane %v69_v5, 3  ;;  %v1229_v10 = vrot.slane %v1226_v6, 3  ;;  %v1047_v23 = vld [vmem:[#allocation5 + $0x60] sm:$0xff]  ;;  %v1281_v42 = vld [vmem:[#allocation2 + $0x10] sm:$0xf] }
  0x13   :  { %v1040_v11 = vld [vmem:[#allocation5 + $0x28] sm:$0xff]  ;;  %v1232_v12 = vsel %vm124_vm0, %v68_v4, %v116_v7  ;;  %v130_v13 = vsel %vm129_vm1, %v68_v4, %v116_v7  ;;  %v134_v14 = vsel %vm133_vm2, %v68_v4, %v116_v7  ;;  %v138_v17 = vsel %vm137_vm3, %v68_v4, %v116_v7  ;;  %v1039_v28 = vld [vmem:[#allocation5 + $0x20] sm:$0xff]  ;;  %v1038_v43 = vld [vmem:[#allocation5 + $0x18] sm:$0xff]  ;;  %s1186_s12 = smov [#allocation8]   ;;  %s932_s16 = sshll.u32 %s1488_s5, 4  ;;  %s933_s16 = int_to_ptr.hbm [resolvable:$true] %s932_s16 }
  0x14   :  { %436 = vmatpush.bf16.msra.mxu0 %v1049_v2  ;;  %1052 = vmatpush.bf16.msra.mxu3 %v1049_v2  ;;  %v1236_v15 = vrot.slane %v130_v13, 1  ;;  %v1238_v16 = vrot.slane %v134_v14, 2  ;;  %v1242_v18 = vsel %vm124_vm0, %v69_v5, %v117_v9  ;;  %v1244_v19 = vrot.slane %v138_v17, 3  ;;  %v71_v45 = vld [vmem:[#allocation2 + $0xc] sm:$0xf]  ;;  %v1045_v47 = vld [vmem:[#allocation5 + $0x50] sm:$0xff] }
  0x15   :  { %619 = vmatpush.bf16.msra.mxu1 %v1041_v3  ;;  %1060 = vmatpush.bf16.msra.mxu2 %v1041_v3  ;;  %v145_v20 = vsel %vm129_vm1, %v69_v5, %v117_v9  ;;  %v148_v21 = vsel %vm133_vm2, %v69_v5, %v117_v9  ;;  %v1249_v22 = vsel %vm137_vm3, %v69_v5, %v117_v9  ;;  %v232_v30 = vunpack.i.h.s16 %v1232_v12  ;;  %v1037_v49 = vld [vmem:[#allocation5 + $0x10] sm:$0xff]  ;;  %v1044_v55 = vld [vmem:[#allocation5 + $0x48] sm:$0xff]  ;;  %v1043_v4 = vld [vmem:[#allocation5 + $0x40] sm:$0xff]  ;;  %s930_s13 = sshll.u32 %s1186_s12, 4  ;;  %s931_s13 = int_to_ptr.vmem [resolvable:$true] %s930_s13 }
  0x16   :  { %v1251_v24 = vrot.slane %v145_v20, 1  ;;  %v1253_v25 = vrot.slane %v148_v21, 2  ;;  %v153_v26 = vrot.slane %v1249_v22, 3  ;;  %v1259_v27 = vsel %vm124_vm0, %v1226_v6, %v1229_v10  ;;  %v1036_v59 = vld [vmem:[#allocation5 + $0x8] sm:$0xff]  ;;  %v1035_v9 = vld [vmem:[#allocation5] sm:$0xff] }
  0x17   :  { %v158_v29 = vsel %vm129_vm1, %v1226_v6, %v1229_v10  ;;  %v234_v31 = vunpack.i.h.s16 %v1236_v15  ;;  %v236_v32 = vunpack.i.h.s16 %v1238_v16  ;;  %v238_v34 = vunpack.i.h.s16 %v1244_v19  ;;  %v74_v13 = vld [vmem:[#allocation2 + $0x18] sm:$0xf] }
  0x18   :  { %437 = vmatpush.bf16.msra.mxu0 %v1048_v8  ;;  %1053 = vmatpush.bf16.msra.mxu3 %v1048_v8  ;;  %v1267_v33 = vrot.slane %v158_v29, 1  ;;  %v239_v35 = vunpack.i.h.s16 %v1242_v18  ;;  %v246_v36 = vunpack.i.h.s16 %v1259_v27  ;;  %329 = vst [vmem:[#allocation1 + $0x4] ss:$9 sm:$0xff] %v1251_v24  ;;  %v943_v37 = vpack.i.b16 %v1236_v15, %v232_v30 }
  0x19   :  { %620 = vmatpush.bf16.msra.mxu1 %v1040_v11  ;;  %1061 = vmatpush.bf16.msra.mxu2 %v1040_v11  ;;  %v944_v38 = vpack.i.b16 %v1238_v16, %v234_v31  ;;  %v945_v39 = vpack.i.b16 %v1244_v19, %v236_v32  ;;  %332 = vst [vmem:[#allocation1 + $0x5] ss:$9 sm:$0xff] %v1253_v25  ;;  %v120_v46 = vrot.slane %v1281_v42, 3  ;;  %v119_v48 = vrot.slane %v71_v45, 3 }
  0x1a   :  { %v291_v41 = vpack.i.b16 %v239_v35, %v238_v34  ;;  %335 = vst [vmem:[#allocation1 + $0x6] ss:$9 sm:$0xff] %v153_v26  ;;  %v946_v44 = vpack.i.b16 %v1267_v33, %v246_v36  ;;  %v161_v50 = vsel %vm133_vm2, %v1226_v6, %v1229_v10  ;;  %v164_v51 = vsel %vm137_vm3, %v1226_v6, %v1229_v10  ;;  %v73_v10 = vld [vmem:[#allocation2 + $0x14] sm:$0xf] }
  0x1b   :  { %317 = vst [vmem:[#allocation1] ss:$9 sm:$0xff] %v943_v37  ;;  %v171_v52 = vsel %vm129_vm1, %v71_v45, %v119_v48  ;;  %v174_v53 = vsel %vm133_vm2, %v71_v45, %v119_v48  ;;  %v184_v54 = vsel %vm129_vm1, %v1281_v42, %v120_v46  ;;  %v1295_v56 = vrot.slane %v161_v50, 2 }
  0x1c   :  { %438 = vmatpush.bf16.msra.mxu0 %v1047_v23  ;;  %1054 = vmatpush.bf16.msra.mxu3 %v1047_v23  ;;  %320 = vst [vmem:[#allocation1 + $0x1] ss:$9 sm:$0xff] %v944_v38  ;;  %v1297_v57 = vrot.slane %v164_v51, 3  ;;  %v1300_v58 = vsel %vm137_vm3, %v71_v45, %v119_v48  ;;  %v1303_v60 = vsel %vm124_vm0, %v71_v45, %v119_v48  ;;  %v1305_v61 = vrot.slane %v171_v52, 1 }
  0x1d   :  { %621 = vmatpush.bf16.msra.mxu1 %v1039_v28  ;;  %1062 = vmatpush.bf16.msra.mxu2 %v1039_v28  ;;  %323 = vst [vmem:[#allocation1 + $0x2] ss:$9 sm:$0xff] %v945_v39  ;;  %v1307_v62 = vrot.slane %v174_v53, 2  ;;  %v1311_v63 = vsel %vm124_vm0, %v1281_v42, %v120_v46  ;;  %v1313_v0 = vrot.slane %v184_v54, 1  ;;  %v179_v1 = vrot.slane %v1300_v58, 3 }
  0x1e   :  { %326 = vst [vmem:[#allocation1 + $0x3] ss:$9 sm:$0xff] %v291_v41  ;;  %v187_v2 = vsel %vm133_vm2, %v1281_v42, %v120_v46  ;;  %v248_v3 = vunpack.i.h.s16 %v1267_v33  ;;  %v250_v6 = vunpack.i.h.s16 %v1295_v56  ;;  %v252_v7 = vunpack.i.h.s16 %v1297_v57 }
  0x1f   :  { %338 = vst [vmem:[#allocation1 + $0x7] ss:$9 sm:$0xff] %v946_v44  ;;  %v253_v8 = vunpack.i.h.s16 %v1303_v60  ;;  %v260_v11 = vunpack.i.h.s16 %v1311_v63  ;;  %v1324_v14 = vrot.slane %v187_v2, 2  ;;  %v262_v17 = vunpack.i.h.s16 %v1313_v0 }
  0x20   :  { %439 = vmatpush.bf16.msra.mxu0 %v1046_v40  ;;  %1055 = vmatpush.bf16.msra.mxu3 %v1046_v40  ;;  %v947_v20 = vpack.i.b16 %v1295_v56, %v248_v3  ;;  %v948_v21 = vpack.i.b16 %v1297_v57, %v250_v6  ;;  %v121_v23 = vrot.slane %v73_v10, 3  ;;  %v190_v28 = vsel %vm137_vm3, %v1281_v42, %v120_v46 }
  0x21   :  { %622 = vmatpush.bf16.msra.mxu1 %v1038_v43  ;;  %1063 = vmatpush.bf16.msra.mxu2 %v1038_v43  ;;  %v298_v29 = vpack.i.b16 %v253_v8, %v252_v7  ;;  %v122_v30 = vrot.slane %v74_v13, 3  ;;  %v949_v31 = vpack.i.b16 %v1313_v0, %v260_v11  ;;  %v950_v32 = vpack.i.b16 %v1324_v14, %v262_v17 }
  0x22   :  { %v1338_v34 = vrot.slane %v190_v28, 3  ;;  %v1341_v36 = vsel %vm124_vm0, %v73_v10, %v121_v23  ;;  %v264_v39 = vunpack.i.h.s16 %v1324_v14  ;;  %v197_v44 = vsel %vm129_vm1, %v73_v10, %v121_v23 }
  0x23   :  { %v210_v37 = vsel %vm129_vm1, %v74_v13, %v122_v30  ;;  %v213_v38 = vsel %vm133_vm2, %v74_v13, %v122_v30  ;;  %v267_v41 = vunpack.i.h.s16 %v1341_v36  ;;  %v1349_v42 = vsel %vm124_vm0, %v74_v13, %v122_v30 }
  0x24   :  { %440 = vmatpush.bf16.msra.mxu0 %v1045_v47  ;;  %1056 = vmatpush.bf16.msra.mxu3 %v1045_v47  ;;  %v266_v40 = vunpack.i.h.s16 %v1338_v34  ;;  %v1351_v43 = vrot.slane %v210_v37, 1  ;;  %v1354_v45 = vrot.slane %v213_v38, 2  ;;  %v200_v46 = vsel %vm133_vm2, %v73_v10, %v121_v23 }
  0x25   :  { %623 = vmatpush.bf16.msra.mxu1 %v1037_v49  ;;  %1064 = vmatpush.bf16.msra.mxu2 %v1037_v49  ;;  %v216_v47 = vsel %vm137_vm3, %v74_v13, %v122_v30  ;;  %v951_v48 = vpack.i.b16 %v1338_v34, %v264_v39  ;;  %v75_v49 = vld [vmem:[#allocation2 + $0x1c] sm:$0xf]  ;;  %v1360_v50 = vsel %vm137_vm3, %v73_v10, %v121_v23  ;;  %v274_v51 = vunpack.i.h.s16 %v1349_v42 }
  0x26   :  { %v339_v5 = vld [vmem:[#allocation1] sm:$0xff]  ;;  %v305_v52 = vpack.i.b16 %v267_v41, %v266_v40  ;;  %v1365_v53 = vrot.slane %v197_v44, 1  ;;  %v276_v54 = vunpack.i.h.s16 %v1351_v43  ;;  %v278_v2 = vunpack.i.h.s16 %v1354_v45 }
  0x27   :  { %347 = vst [vmem:[#allocation1 + $0x3] ss:$9 sm:$0xff] %v1305_v61  ;;  %v952_v6 = vpack.i.b16 %v1351_v43, %v274_v51  ;;  %v243_v37 = vunpack.i.h.s16 %v1253_v25  ;;  %v987_v39 = vpack.i.b16 %v1242_v18, %v1244_v19  ;;  %v988_v40 = vpack.i.b16 %v1251_v24, %v239_v35 }
  0x28   :  { %441 = vmatpush.bf16.msra.mxu0 %v1044_v55  ;;  %1057 = vmatpush.bf16.msra.mxu3 %v1044_v55  ;;  %349 = vst [vmem:[#allocation1 + $0x4] ss:$9 sm:$0xff] %v1307_v62  ;;  %v1368_v55 = vrot.slane %v200_v46, 2  ;;  %v953_v7 = vpack.i.b16 %v1354_v45, %v276_v54  ;;  %v255_v18 = vunpack.i.h.s16 %v1305_v61  ;;  %v996_v35 = vpack.i.b16 %v1365_v53, %v267_v41 }
  0x29   :  { %624 = vmatpush.bf16.msra.mxu1 %v1036_v59  ;;  %1065 = vmatpush.bf16.msra.mxu2 %v1036_v59  ;;  %351 = vst [vmem:[#allocation1 + $0x5] ss:$9 sm:$0xff] %v179_v1  ;;  %v1370_v59 = vrot.slane %v216_v47, 3  ;;  %v990_v46 = vpack.i.b16 %v153_v26, %v243_v37  ;;  %vm780_vm4 = vcmask 1046528   ;;  %vm892_vm5 = vcmask 1044484  }
  0x2a   :  { %341 = vst [vmem:[#allocation1] ss:$9 sm:$0xff] %v947_v20  ;;  %v993_v22 = vpack.i.b16 %v1307_v62, %v255_v18  ;;  %vm895_vm6 = vcmask 1045509   ;;  %vm898_vm7 = vcmask 1046534   ;;  %vm901_vm8 = vcmask 1047559  }
  0x2b   :  { %343 = vst [vmem:[#allocation1 + $0x1] ss:$9 sm:$0xff] %v948_v21  ;;  %v280_v11 = vunpack.i.h.s16 %v1370_v59 }
  0x2c   :  { %442 = vmatpush.bf16.msra.mxu0 %v1043_v4  ;;  %1058 = vmatpush.bf16.msra.mxu3 %v1043_v4  ;;  %345 = vst [vmem:[#allocation1 + $0x2] ss:$9 sm:$0xff] %v298_v29  ;;  %v123_v4 = vrot.slane %v75_v49, 3 }
  0x2d   :  { %625 = vmatpush.bf16.msra.mxu1 %v1035_v9  ;;  %1066 = vmatpush.bf16.msra.mxu2 %v1035_v9  ;;  %353 = vst [vmem:[#allocation1 + $0x6] ss:$9 sm:$0xff] %v949_v31  ;;  %v954_v9 = vpack.i.b16 %v1370_v59, %v278_v2 }
  0x2e   :  { %355 = vst [vmem:[#allocation1 + $0x7] ss:$9 sm:$0xff] %v950_v32  ;;  %v1380_v10 = vsel %vm124_vm0, %v75_v49, %v123_v4  ;;  %v223_v17 = vsel %vm129_vm1, %v75_v49, %v123_v4  ;;  %v226_v20 = vsel %vm133_vm2, %v75_v49, %v123_v4  ;;  %v1389_v21 = vsel %vm137_vm3, %v75_v49, %v123_v4 }
  0x2f   :  { %443 = vmatmul.bf16.vlgmr.msra.gmra.mxu0 %v339_v5  ;;  %v205_v5 = vrot.slane %v1360_v50, 3  ;;  %v281_v13 = vunpack.i.h.s16 %v1380_v10  ;;  %v225_v28 = vrot.slane %v223_v17, 1  ;;  %v1393_v29 = vrot.slane %v226_v20, 2 }
  0x30   :  { %v231_v30 = vrot.slane %v1389_v21, 3  ;;  %v241_v32 = vunpack.i.h.s16 %v1251_v24 }
  0x31   :  { %v312_v23 = vpack.i.b16 %v281_v13, %v280_v11  ;;  %v283_v58 = vunpack.i.h.s16 %v225_v28 }
  0x32   :  { %v989_v44 = vpack.i.b16 %v1253_v25, %v241_v32  ;;  %v269_v25 = vunpack.i.h.s16 %v1365_v53  ;;  %v870_v32 = vld [vmem:[#allocation7 + $0x68] sm:$0xff] }
  0x35   :  { %v356_v3 = vld [vmem:[#allocation1] sm:$0xff] }
  0x36   :  { %358 = vst [vmem:[#allocation1] ss:$9 sm:$0xff] %v951_v48  ;;  %448 = vmatmul.bf16.vlgmr.msra.gmra.mxu3 %v356_v3 }
  0x37   :  { %360 = vst [vmem:[#allocation1 + $0x1] ss:$9 sm:$0xff] %v305_v52 }
  0x38   :  { %362 = vst [vmem:[#allocation1 + $0x2] ss:$9 sm:$0xff] %v1365_v53 }
  0x39   :  { %364 = vst [vmem:[#allocation1 + $0x3] ss:$9 sm:$0xff] %v1368_v55 }
  0x3a   :  { %366 = vst [vmem:[#allocation1 + $0x4] ss:$9 sm:$0xff] %v205_v5 }
  0x3b   :  { %368 = vst [vmem:[#allocation1 + $0x5] ss:$9 sm:$0xff] %v952_v6 }
  0x3c   :  { %370 = vst [vmem:[#allocation1 + $0x6] ss:$9 sm:$0xff] %v953_v7 }
  0x3d   :  { %372 = vst [vmem:[#allocation1 + $0x7] ss:$9 sm:$0xff] %v954_v9 }
  0x44   :  { %v373_v31 = vld [vmem:[#allocation1] sm:$0xff] }
  0x45   :  { %375 = vst [vmem:[#allocation1] ss:$9 sm:$0xff] %v312_v23 }
  0x46   :  { %377 = vst [vmem:[#allocation1 + $0x1] ss:$9 sm:$0xff] %v225_v28  ;;  %453 = vmatmul.bf16.gmra.mxu3 %v373_v31 }
  0x47   :  { %379 = vst [vmem:[#allocation1 + $0x2] ss:$9 sm:$0xff] %v1393_v29 }
  0x48   :  { %381 = vst [vmem:[#allocation1 + $0x3] ss:$9 sm:$0xff] %v231_v30 }
  0x4f   :  { %v382_v38 = vld [vmem:[#allocation1] sm:$0xff] }
  0x50   :  { %500 = vst [vmem:[#allocation1] ss:$9 sm:$0xff] %v1232_v12  ;;  %v257_v12 = vunpack.i.h.s16 %v1307_v62  ;;  %v1000_v62 = vpack.i.b16 %v225_v28, %v281_v13 }
  0x51   :  { %503 = vst [vmem:[#allocation1 + $0x1] ss:$9 sm:$0xff] %v1236_v15  ;;  %v991_v15 = vpack.i.b16 %v1303_v60, %v1297_v57  ;;  %v285_v60 = vunpack.i.h.s16 %v1393_v29 }
  0x52   :  { %506 = vst [vmem:[#allocation1 + $0x2] ss:$9 sm:$0xff] %v1238_v16  ;;  %v992_v16 = vpack.i.b16 %v1305_v61, %v253_v8  ;;  %v994_v24 = vpack.i.b16 %v179_v1, %v257_v12  ;;  %v999_v61 = vpack.i.b16 %v1380_v10, %v1370_v59  ;;  %v866_v12 = vld [vmem:[#allocation7 + $0x48] sm:$0xff] }
  0x53   :  { %509 = vst [vmem:[#allocation1 + $0x3] ss:$9 sm:$0xff] %v987_v39  ;;  %v1002_v1 = vpack.i.b16 %v231_v30, %v285_v60  ;;  %v871_v30 = vld [vmem:[#allocation7 + $0x70] sm:$0xff]  ;;  %v861_v60 = vld [vmem:[#allocation7 + $0x20] sm:$0xff] }
  0x54   :  { %512 = vst [vmem:[#allocation1 + $0x4] ss:$9 sm:$0xff] %v988_v40  ;;  %v868_v40 = vld [vmem:[#allocation7 + $0x58] sm:$0xff] }
  0x55   :  { %515 = vst [vmem:[#allocation1 + $0x5] ss:$9 sm:$0xff] %v989_v44 }
  0x56   :  { %518 = vst [vmem:[#allocation1 + $0x6] ss:$9 sm:$0xff] %v990_v46  ;;  %458 = vmatmul.bf16.gmra.mxu3 %v382_v38  ;;  %v869_v38 = vld [vmem:[#allocation7 + $0x60] sm:$0xff]  ;;  %v867_v46 = vld [vmem:[#allocation7 + $0x50] sm:$0xff] }
  0x57   :  { %521 = vst [vmem:[#allocation1 + $0x7] ss:$9 sm:$0xff] %v1259_v27  ;;  %v271_v27 = vunpack.i.h.s16 %v1368_v55 }
  0x59   :  { %v998_v57 = vpack.i.b16 %v205_v5, %v271_v27 }
  0x5e   :  { %v522_v19 = vld [vmem:[#allocation1] sm:$0xff] }
  0x5f   :  { %626 = vmatmul.bf16.vlgmr.msra.gmra.mxu1 %v522_v19  ;;  %524 = vst [vmem:[#allocation1] ss:$9 sm:$0xff] %v1267_v33  ;;  %v995_v33 = vpack.i.b16 %v1341_v36, %v1338_v34 }
  0x60   :  { %526 = vst [vmem:[#allocation1 + $0x1] ss:$9 sm:$0xff] %v1295_v56  ;;  %v997_v56 = vpack.i.b16 %v1368_v55, %v269_v25 }
  0x61   :  { %536 = vst [vmem:[#allocation1 + $0x6] ss:$9 sm:$0xff] %v1311_v63  ;;  %v1001_v63 = vpack.i.b16 %v1393_v29, %v283_v58  ;;  %v872_v29 = vld [vmem:[#allocation7 + $0x78] sm:$0xff]  ;;  %v862_v58 = vld [vmem:[#allocation7 + $0x28] sm:$0xff] }
  0x62   :  { %538 = vst [vmem:[#allocation1 + $0x7] ss:$9 sm:$0xff] %v1313_v0  ;;  %904 = vmatpush.msrb.mxu2 %v872_v29 }
  0x63   :  { %528 = vst [vmem:[#allocation1 + $0x2] ss:$9 sm:$0xff] %v991_v15 }
  0x64   :  { %530 = vst [vmem:[#allocation1 + $0x3] ss:$9 sm:$0xff] %v992_v16  ;;  %905 = vmatpush.msrb.mxu2 %v871_v30 }
  0x65   :  { %532 = vst [vmem:[#allocation1 + $0x4] ss:$9 sm:$0xff] %v993_v22 }
  0x66   :  { %534 = vst [vmem:[#allocation1 + $0x5] ss:$9 sm:$0xff] %v994_v24  ;;  %906 = vmatpush.msrb.mxu2 %v870_v32 }
  0x68   :  { %907 = vmatpush.msrb.mxu2 %v869_v38 }
  0x6a   :  { %908 = vmatpush.msrb.mxu2 %v868_v40 }
  0x6c   :  { %909 = vmatpush.msrb.mxu2 %v867_v46 }
  0x6d   :  { %v539_v26 = vld [vmem:[#allocation1] sm:$0xff] }
  0x6e   :  { %541 = vst [vmem:[#allocation1] ss:$9 sm:$0xff] %v1324_v14  ;;  %910 = vmatpush.msrb.mxu2 %v866_v12 }
  0x6f   :  { %631 = vmatmul.bf16.gmra.mxu1 %v539_v26  ;;  %551 = vst [vmem:[#allocation1 + $0x5] ss:$9 sm:$0xff] %v1349_v42  ;;  %v865_v26 = vld [vmem:[#allocation7 + $0x40] sm:$0xff] }
  0x70   :  { %553 = vst [vmem:[#allocation1 + $0x6] ss:$9 sm:$0xff] %v1351_v43  ;;  %911 = vmatpush.msrb.mxu2 %v865_v26 }
  0x71   :  { %555 = vst [vmem:[#allocation1 + $0x7] ss:$9 sm:$0xff] %v1354_v45 }
  0x72   :  { %543 = vst [vmem:[#allocation1 + $0x1] ss:$9 sm:$0xff] %v995_v33 }
  0x73   :  { %545 = vst [vmem:[#allocation1 + $0x2] ss:$9 sm:$0xff] %v996_v35  ;;  %v864_v35 = vld [vmem:[#allocation7 + $0x38] sm:$0xff] }
  0x74   :  { %547 = vst [vmem:[#allocation1 + $0x3] ss:$9 sm:$0xff] %v997_v56  ;;  %v863_v56 = vld [vmem:[#allocation7 + $0x30] sm:$0xff]  ;;  %912 = vmatpush.msrb.mxu2 %v864_v35 }
  0x75   :  { %549 = vst [vmem:[#allocation1 + $0x4] ss:$9 sm:$0xff] %v998_v57 }
  0x76   :  { %913 = vmatpush.msrb.mxu2 %v863_v56 }
  0x78   :  { %914 = vmatpush.msrb.mxu2 %v862_v58 }
  0x7a   :  { %915 = vmatpush.msrb.mxu2 %v861_v60 }
  0x7c   :  { %v556_v0 = vld [vmem:[#allocation1] sm:$0xff] }
  0x7d   :  { %636 = vmatmul.bf16.vlgmr.msra.gmra.mxu2 %v556_v0  ;;  %558 = vst [vmem:[#allocation1] ss:$9 sm:$0xff] %v999_v61  ;;  %v860_v61 = vld [vmem:[#allocation7 + $0x18] sm:$0xff]  ;;  %v859_v0 = vld [vmem:[#allocation7 + $0x10] sm:$0xff] }
  0x7e   :  { %560 = vst [vmem:[#allocation1 + $0x1] ss:$9 sm:$0xff] %v1000_v62  ;;  %916 = vmatpush.msrb.mxu2 %v860_v61 }
  0x7f   :  { %562 = vst [vmem:[#allocation1 + $0x2] ss:$9 sm:$0xff] %v1001_v63 }
  0x80   :  { %564 = vst [vmem:[#allocation1 + $0x3] ss:$9 sm:$0xff] %v1002_v1  ;;  %917 = vmatpush.msrb.mxu2 %v859_v0 }
  0x87   :  { %v565_v8 = vld [vmem:[#allocation1] sm:$0xff] }
  0x8d   :  { %641 = vmatmul.bf16.gmra.mxu2 %v565_v8 }
  0xac   :  { %v444_v34 = vpop.f32.mrf.mxu0 }
  0xb4   :  { %v446_v52 = vpop.f32.mrf.mxu0 }
  0xb9   :  { %v449_v14 = vpop.f32.mrf.mxu3 }
  0xc1   :  { %v451_v51 = vpop.f32.mrf.mxu3 }
  0xc9   :  { %v1447_v5 = vpop.f32.mrf.mxu3 }
  0xd1   :  { %v1449_v10 = vpop.f32.mrf.mxu3 }
  0xd9   :  { %v1453_v37 = vpop.f32.mrf.mxu3 }
  0xdc   :  { %v627_v36 = vpop.f32.mrf.mxu1 }
  0xdd   :  { %v628_v41 = vadd.f32 %v627_v36, %v444_v34  ;;  %v858_v36 = vld [vmem:[#allocation7 + $0x8] sm:$0xff] }
  0xde   :  { %918 = vmatpush.msrb.mxu2 %v858_v36 }
  0xdf   :  { %v653_v42 = vrot.slane %v628_v41, 1  ;;  %v654_v43 = vrot.slane %v628_v41, 2  ;;  %v655_v45 = vrot.slane %v628_v41, 3  ;;  %702 = vst [vmem:[#allocation1] ss:$9 sm:$0xff] %v628_v41  ;;  %v656_v47 = vrot.slane %v628_v41, 4 }
  0xe0   :  { %v657_v48 = vrot.slane %v628_v41, 5  ;;  %v658_v49 = vrot.slane %v628_v41, 6  ;;  %v659_v54 = vrot.slane %v628_v41, 7 }
  0xe1   :  { %704 = vst [vmem:[#allocation1 + $0x1] ss:$9 sm:$0xff] %v653_v42  ;;  %v461_v22 = vpop.f32.mrf.mxu3 }
  0xe2   :  { %706 = vst [vmem:[#allocation1 + $0x2] ss:$9 sm:$0xff] %v654_v43 }
  0xe3   :  { %708 = vst [vmem:[#allocation1 + $0x3] ss:$9 sm:$0xff] %v655_v45  ;;  %v857_v45 = vld [vmem:[#allocation7] sm:$0xff] }
  0xe4   :  { %710 = vst [vmem:[#allocation1 + $0x4] ss:$9 sm:$0xff] %v656_v47  ;;  %v629_v50 = vpop.f32.mrf.mxu1  ;;  %919 = vmatpush.msrb.mxu2 %v857_v45 }
  0xe5   :  { %712 = vst [vmem:[#allocation1 + $0x5] ss:$9 sm:$0xff] %v657_v48  ;;  %v630_v53 = vadd.f32 %v629_v50, %v446_v52 }
  0xe6   :  { %714 = vst [vmem:[#allocation1 + $0x6] ss:$9 sm:$0xff] %v658_v49 }
  0xe7   :  { %v660_v55 = vrot.slane %v630_v53, 1  ;;  %v661_v2 = vrot.slane %v630_v53, 2  ;;  %v662_v3 = vrot.slane %v630_v53, 3  ;;  %v663_v4 = vrot.slane %v630_v53, 4 }
  0xe8   :  { %v664_v6 = vrot.slane %v630_v53, 5  ;;  %v665_v11 = vrot.slane %v630_v53, 6  ;;  %v666_v13 = vrot.slane %v630_v53, 7 }
  0xec   :  { %v632_v7 = vpop.f32.mrf.mxu1 }
  0xed   :  { %v1445_v59 = vld [vmem:[#allocation1] sm:$0xff]  ;;  %v633_v9 = vadd.f32 %v632_v7, %v449_v14 }
  0xee   :  { %716 = vst [vmem:[#allocation1] ss:$9 sm:$0xff] %v659_v54 }
  0xef   :  { %717 = vst [vmem:[#allocation1 + $0x1] ss:$9 sm:$0xff] %v630_v53  ;;  %v667_v20 = vrot.slane %v633_v9, 1  ;;  %v668_v21 = vrot.slane %v633_v9, 2  ;;  %v669_v23 = vrot.slane %v633_v9, 3  ;;  %v670_v28 = vrot.slane %v633_v9, 4 }
  0xf0   :  { %718 = vst [vmem:[#allocation1 + $0x2] ss:$9 sm:$0xff] %v660_v55  ;;  %v671_v18 = vrot.slane %v633_v9, 5  ;;  %v672_v15 = vrot.slane %v633_v9, 6  ;;  %v673_v24 = vrot.slane %v633_v9, 7 }
  0xf1   :  { %719 = vst [vmem:[#allocation1 + $0x3] ss:$9 sm:$0xff] %v661_v2 }
  0xf2   :  { %720 = vst [vmem:[#allocation1 + $0x4] ss:$9 sm:$0xff] %v662_v3 }
  0xf3   :  { %721 = vst [vmem:[#allocation1 + $0x5] ss:$9 sm:$0xff] %v663_v4 }
  0xf4   :  { %722 = vst [vmem:[#allocation1 + $0x6] ss:$9 sm:$0xff] %v664_v6  ;;  %v634_v39 = vpop.f32.mrf.mxu1 }
  0xf5   :  { %v635_v44 = vadd.f32 %v634_v39, %v451_v51 }
  0xf7   :  { %v674_v25 = vrot.slane %v635_v44, 1  ;;  %v675_v27 = vrot.slane %v635_v44, 2  ;;  %v676_v33 = vrot.slane %v635_v44, 3  ;;  %v677_v63 = vrot.slane %v635_v44, 4 }
  0xf8   :  { %v678_v1 = vrot.slane %v635_v44, 5  ;;  %v679_v14 = vrot.slane %v635_v44, 6  ;;  %v680_v41 = vrot.slane %v635_v44, 7 }
  0xfb   :  { %v1451_v17 = vld [vmem:[#allocation1] sm:$0xff] }
  0xfc   :  { %724 = vst [vmem:[#allocation1] ss:$9 sm:$0xff] %v665_v11 }
  0xfd   :  { %725 = vst [vmem:[#allocation1 + $0x1] ss:$9 sm:$0xff] %v666_v13 }
  0xfe   :  { %726 = vst [vmem:[#allocation1 + $0x2] ss:$9 sm:$0xff] %v633_v9  ;;  %v788_v9 = vsel %vm780_vm4, %v1451_v17, -inf  ;;  %v781_v17 = vsel %vm780_vm4, %v1445_v59, -inf }
  0xff   :  { %727 = vst [vmem:[#allocation1 + $0x3] ss:$9 sm:$0xff] %v667_v20  ;;  %v789_v20 = vrot.slane %v788_v9, 4  ;;  %v782_v38 = vrot.slane %v781_v17, 4 }
 0x100   :  { %728 = vst [vmem:[#allocation1 + $0x4] ss:$9 sm:$0xff] %v668_v21  ;;  %v637_v31 = vpop.f32.mrf.mxu2 }
 0x101   :  { %729 = vst [vmem:[#allocation1 + $0x5] ss:$9 sm:$0xff] %v669_v23  ;;  %v638_v62 = vadd.f32 %v637_v31, %v1447_v5  ;;  %v790_v31 = vmax.f32 %v788_v9, %v789_v20  ;;  %v783_v59 = vmax.f32 %v781_v17, %v782_v38 }
 0x102   :  { %730 = vst [vmem:[#allocation1 + $0x6] ss:$9 sm:$0xff] %v670_v28 }
 0x103   :  { %v681_v42 = vrot.slane %v638_v62, 1  ;;  %v682_v43 = vrot.slane %v638_v62, 2  ;;  %v683_v47 = vrot.slane %v638_v62, 3  ;;  %v684_v48 = vrot.slane %v638_v62, 4 }
 0x104   :  { %v685_v50 = vrot.slane %v638_v62, 5  ;;  %v686_v52 = vrot.slane %v638_v62, 6  ;;  %v687_v53 = vrot.slane %v638_v62, 7 }
 0x108   :  { %v639_v19 = vpop.f32.mrf.mxu2 }
 0x109   :  { %v1455_v16 = vld [vmem:[#allocation1] sm:$0xff]  ;;  %v640_v51 = vadd.f32 %v639_v19, %v1449_v10  ;;  %v791_v19 = vrot.slane %v790_v31, 2 }
 0x10a   :  { %732 = vst [vmem:[#allocation1] ss:$9 sm:$0xff] %v671_v18  ;;  %v795_v11 = vsel %vm780_vm4, %v1455_v16, -inf }
 0x10b   :  { %733 = vst [vmem:[#allocation1 + $0x1] ss:$9 sm:$0xff] %v672_v15  ;;  %v688_v54 = vrot.slane %v640_v51, 1  ;;  %v689_v55 = vrot.slane %v640_v51, 2  ;;  %v690_v2 = vrot.slane %v640_v51, 3  ;;  %v691_v4 = vrot.slane %v640_v51, 4 }
 0x10c   :  { %734 = vst [vmem:[#allocation1 + $0x2] ss:$9 sm:$0xff] %v673_v24  ;;  %v692_v5 = vrot.slane %v640_v51, 5  ;;  %v693_v6 = vrot.slane %v640_v51, 6  ;;  %v694_v10 = vrot.slane %v640_v51, 7  ;;  %v796_v23 = vrot.slane %v795_v11, 4 }
 0x10d   :  { %735 = vst [vmem:[#allocation1 + $0x3] ss:$9 sm:$0xff] %v635_v44  ;;  %v792_v56 = vmax.f32 %v790_v31, %v791_v19 }
 0x10e   :  { %736 = vst [vmem:[#allocation1 + $0x4] ss:$9 sm:$0xff] %v674_v25 }
 0x10f   :  { %737 = vst [vmem:[#allocation1 + $0x5] ss:$9 sm:$0xff] %v675_v27 }
 0x110   :  { %738 = vst [vmem:[#allocation1 + $0x6] ss:$9 sm:$0xff] %v676_v33  ;;  %v642_v57 = vpop.f32.mrf.mxu2 }
 0x111   :  { %v643_v7 = vadd.f32 %v642_v57, %v1453_v37  ;;  %v797_v37 = vmax.f32 %v795_v11, %v796_v23 }
 0x113   :  { %v695_v40 = vrot.slane %v643_v7, 1  ;;  %v696_v46 = vrot.slane %v643_v7, 2  ;;  %v697_v15 = vrot.slane %v643_v7, 3  ;;  %v798_v16 = vrot.slane %v797_v37, 2 }
 0x114   :  { %v698_v24 = vrot.slane %v643_v7, 4  ;;  %v699_v27 = vrot.slane %v643_v7, 5  ;;  %v700_v35 = vrot.slane %v643_v7, 6  ;;  %v701_v60 = vrot.slane %v643_v7, 7 }
 0x115   :  { %v799_v61 = vmax.f32 %v797_v37, %v798_v16 }
 0x117   :  { %v739_v8 = vld [vmem:[#allocation1] sm:$0xff] }
 0x118   :  { %740 = vst [vmem:[#allocation1] ss:$9 sm:$0xff] %v677_v63  ;;  %v644_v34 = vpop.f32.mrf.mxu2  ;;  %v802_v13 = vsel %vm780_vm4, %v739_v8, -inf  ;;  %v793_v8 = vrot.slane %v792_v56, 1 }
 0x119   :  { %741 = vst [vmem:[#allocation1 + $0x1] ss:$9 sm:$0xff] %v678_v1  ;;  %v803_v29 = vrot.slane %v802_v13, 4  ;;  %v800_v34 = vrot.slane %v799_v61, 1 }
 0x11a   :  { %742 = vst [vmem:[#allocation1 + $0x2] ss:$9 sm:$0xff] %v679_v14  ;;  %v794_v45 = vmax.f32 %v792_v56, %v793_v8 }
 0x11b   :  { %743 = vst [vmem:[#allocation1 + $0x3] ss:$9 sm:$0xff] %v680_v41  ;;  %v804_v39 = vmax.f32 %v802_v13, %v803_v29 }
 0x11c   :  { %744 = vst [vmem:[#allocation1 + $0x4] ss:$9 sm:$0xff] %v638_v62  ;;  %v784_v62 = vrot.slane %v783_v59, 2 }
 0x11d   :  { %745 = vst [vmem:[#allocation1 + $0x5] ss:$9 sm:$0xff] %v681_v42  ;;  %v805_v25 = vrot.slane %v804_v39, 2 }
 0x11e   :  { %746 = vst [vmem:[#allocation1 + $0x6] ss:$9 sm:$0xff] %v682_v43  ;;  %v785_v41 = vmax.f32 %v783_v59, %v784_v62 }
 0x11f   :  { %v806_v63 = vmax.f32 %v804_v39, %v805_v25 }
 0x121   :  { %v807_v42 = vrot.slane %v806_v63, 1 }
 0x125   :  { %v747_v49 = vld [vmem:[#allocation1] sm:$0xff] }
 0x126   :  { %748 = vst [vmem:[#allocation1] ss:$9 sm:$0xff] %v683_v47  ;;  %v809_v21 = vsel %vm780_vm4, %v747_v49, -inf }
 0x127   :  { %749 = vst [vmem:[#allocation1 + $0x1] ss:$9 sm:$0xff] %v684_v48  ;;  %v810_v30 = vrot.slane %v809_v21, 4  ;;  %v801_v48 = vmax.f32 %v799_v61, %v800_v34 }
 0x128   :  { %750 = vst [vmem:[#allocation1 + $0x2] ss:$9 sm:$0xff] %v685_v50 }
 0x129   :  { %751 = vst [vmem:[#allocation1 + $0x3] ss:$9 sm:$0xff] %v686_v52  ;;  %v811_v44 = vmax.f32 %v809_v21, %v810_v30  ;;  %v808_v52 = vmax.f32 %v806_v63, %v807_v42 }
 0x12a   :  { %752 = vst [vmem:[#allocation1 + $0x4] ss:$9 sm:$0xff] %v687_v53  ;;  %v1075_v53 = vld [vmem:[%s1485_s2] ss:$0 sm:$0xff] }
 0x12b   :  { %753 = vst [vmem:[#allocation1 + $0x5] ss:$9 sm:$0xff] %v640_v51  ;;  %v812_v33 = vrot.slane %v811_v44, 2  ;;  %v786_v51 = vrot.slane %v785_v41, 1 }
 0x12c   :  { %754 = vst [vmem:[#allocation1 + $0x6] ss:$9 sm:$0xff] %v688_v54 }
 0x12d   :  { %v813_v1 = vmax.f32 %v811_v44, %v812_v33 }
 0x12f   :  { %v814_v43 = vrot.slane %v813_v1, 1 }
 0x131   :  { %v815_v54 = vmax.f32 %v813_v1, %v814_v43 }
 0x133   :  { %v755_v3 = vld [vmem:[#allocation1] sm:$0xff]  ;;  %v845_v11 = vadd.f32 %v1075_v53, %v815_v54 }
 0x134   :  { %756 = vst [vmem:[#allocation1] ss:$9 sm:$0xff] %v689_v55  ;;  %v816_v28 = vsel %vm780_vm4, %v755_v3, -inf }
 0x135   :  { %757 = vst [vmem:[#allocation1 + $0x1] ss:$9 sm:$0xff] %v690_v2  ;;  %v817_v32 = vrot.slane %v816_v28, 4  ;;  %v853_v31 = vmax.f32 %v845_v11, 0.0 }
 0x136   :  { %758 = vst [vmem:[#allocation1 + $0x2] ss:$9 sm:$0xff] %v691_v4  ;;  %v842_v4 = vadd.f32 %v1075_v53, %v794_v45 }
 0x137   :  { %759 = vst [vmem:[#allocation1 + $0x3] ss:$9 sm:$0xff] %v692_v5  ;;  %v818_v12 = vmax.f32 %v816_v28, %v817_v32  ;;  %v891_v19 = vrot.slane %v853_v31, 4 }
 0x138   :  { %760 = vst [vmem:[#allocation1 + $0x4] ss:$9 sm:$0xff] %v693_v6  ;;  %v843_v6 = vadd.f32 %v1075_v53, %v801_v48  ;;  %v850_v21 = vmax.f32 %v842_v4, 0.0 }
 0x139   :  { %761 = vst [vmem:[#allocation1 + $0x5] ss:$9 sm:$0xff] %v694_v10  ;;  %v819_v57 = vrot.slane %v818_v12, 2  ;;  %v844_v10 = vadd.f32 %v1075_v53, %v808_v52 }
 0x13a   :  { %762 = vst [vmem:[#allocation1 + $0x6] ss:$9 sm:$0xff] %v643_v7  ;;  %v787_v7 = vmax.f32 %v785_v41, %v786_v51  ;;  %v851_v28 = vmax.f32 %v843_v6, 0.0  ;;  %v885_v38 = vrot.slane %v850_v21, 7 }
 0x13b   :  { %v820_v14 = vmax.f32 %v818_v12, %v819_v57  ;;  %v852_v30 = vmax.f32 %v844_v10, 0.0  ;;  %v1076_v57 = vld [vmem:[%s1487_s4] ss:$0 sm:$0xff] }
 0x13c   :  { %v841_v17 = vadd.f32 %v1075_v53, %v787_v7 }
 0x13d   :  { %v821_v47 = vrot.slane %v820_v14, 1 }
 0x13f   :  { %v822_v2 = vmax.f32 %v820_v14, %v821_v47 }
 0x141   :  { %v763_v18 = vld [vmem:[#allocation1] sm:$0xff]  ;;  %v846_v20 = vadd.f32 %v1075_v53, %v822_v2 }
 0x142   :  { %764 = vst [vmem:[#allocation1] ss:$9 sm:$0xff] %v695_v40  ;;  %v823_v22 = vsel %vm780_vm4, %v763_v18, -inf  ;;  %v887_v40 = vrot.slane %v851_v28, 6  ;;  %v889_v18 = vrot.slane %v852_v30, 5 }
 0x143   :  { %765 = vst [vmem:[#allocation1 + $0x1] ss:$9 sm:$0xff] %v696_v46  ;;  %v824_v26 = vrot.slane %v823_v22, 4  ;;  %v854_v37 = vmax.f32 %v846_v20, 0.0  ;;  %v849_v46 = vmax.f32 %v841_v17, 0.0 }
 0x144   :  { %766 = vst [vmem:[#allocation1 + $0x2] ss:$9 sm:$0xff] %v697_v15 }
 0x145   :  { %767 = vst [vmem:[#allocation1 + $0x3] ss:$9 sm:$0xff] %v698_v24  ;;  %v825_v58 = vmax.f32 %v823_v22, %v824_v26  ;;  %v886_v15 = vsel %vm129_vm1, %v885_v38, %v849_v46  ;;  %v894_v16 = vrot.slane %v854_v37, 3 }
 0x146   :  { %768 = vst [vmem:[#allocation1 + $0x4] ss:$9 sm:$0xff] %v699_v27  ;;  %v888_v22 = vsel %vm133_vm2, %v887_v40, %v886_v15 }
 0x147   :  { %769 = vst [vmem:[#allocation1 + $0x5] ss:$9 sm:$0xff] %v700_v35  ;;  %v826_v0 = vrot.slane %v825_v58, 2  ;;  %v890_v25 = vsel %vm137_vm3, %v889_v18, %v888_v22 }
 0x148   :  { %770 = vst [vmem:[#allocation1 + $0x6] ss:$9 sm:$0xff] %v701_v60  ;;  %v893_v26 = vsel %vm892_vm5, %v891_v19, %v890_v25 }
 0x149   :  { %v827_v36 = vmax.f32 %v825_v58, %v826_v0  ;;  %v896_v27 = vsel %vm895_vm6, %v894_v16, %v893_v26 }
 0x14b   :  { %v828_v49 = vrot.slane %v827_v36, 1 }
 0x14d   :  { %v829_v5 = vmax.f32 %v827_v36, %v828_v49 }
 0x14f   :  { %v771_v50 = vld [vmem:[#allocation1] sm:$0xff]  ;;  %v847_v23 = vadd.f32 %v1075_v53, %v829_v5 }
 0x150   :  { %v830_v55 = vsel %vm780_vm4, %v771_v50, -inf }
 0x151   :  { %v831_v3 = vrot.slane %v830_v55, 4  ;;  %v855_v39 = vmax.f32 %v847_v23, 0.0 }
 0x153   :  { %v832_v9 = vmax.f32 %v830_v55, %v831_v3  ;;  %v897_v24 = vrot.slane %v855_v39, 2 }
 0x155   :  { %v833_v13 = vrot.slane %v832_v9, 2  ;;  %v899_v35 = vsel %vm898_vm7, %v897_v24, %v896_v27 }
 0x157   :  { %v834_v29 = vmax.f32 %v832_v9, %v833_v13 }
 0x159   :  { %v835_v32 = vrot.slane %v834_v29, 1 }
 0x15b   :  { %v836_v44 = vmax.f32 %v834_v29, %v835_v32 }
 0x15d   :  { %v848_v12 = vadd.f32 %v1075_v53, %v836_v44 }
 0x15f   :  { %v856_v59 = vmax.f32 %v848_v12, 0.0 }
 0x161   :  { %v900_v33 = vrot.slane %v856_v59, 1 }
 0x163   :  { %v902_v56 = vsel %vm901_vm8, %v900_v33, %v899_v35 }
 0x164   :  { %920 = vmatmul.f32.vlgmr.msrb.gmra.mxu2 %v902_v56 }
 0x1e7   :  { %v921_v58 = vpop.f32.mrf.mxu2 }
 0x1e8   :  { %v922_v60 = vadd.f32 %v1076_v57, %v921_v58 }
 0x1ea   :  { %924 = vst [vmem:[#allocation8] sm:$0xff] %v922_v60 }
 0x1eb   :  { %935 = dma.vmem_to_hbm [thread:$0]  %s931_s13, 128, %s933_s16, [#allocation4]  }
 0x1ec   :  { %1177 = dma.done.wait [#allocation4], 128  }
 0x1ed   :  { %1178 = vsyncadd [#allocation4], 4294967168 }
 0x1ee   :  { %940 = vsyncpa [#allocation3], 1 }
 0x1ef   :  { %941 = vsyncpa [#allocation6], 1 }
 0x1f0   :  { %942 = vsyncpa [#allocation4], 1 }

// kernel: tpu_custom_call.1
= control target key start
LH: loop header
LB: loop body
LE: loop exit
PB: predicated region body
PF: predicated region fallthrough
CT: control target
= control target key end

     0   :  { %10 = vsyncpa [#allocation3], 0  ;;  %s1483_s0 = inlined_call_operand.hbm [shape: bf16[8,8,128], index: 0, kind: input, shape index: {}]   ;;  %s1484_s1 = inlined_call_operand.hbm [shape: bf16[256,128], index: 1, kind: input, shape index: {}]   ;;  %s1485_s2 = inlined_call_operand.vmem [shape: f32[1,128], index: 2, kind: input, shape index: {}]   ;;  %s1486_s3 = inlined_call_operand.hbm [shape: f32[128,128], index: 3, kind: input, shape index: {}]   ;;  %s1487_s4 = inlined_call_operand.vmem [shape: f32[1,128], index: 4, kind: input, shape index: {}]   ;;  %s1488_s5 = inlined_call_operand.hbm [shape: f32[8,128], index: 5, kind: output, shape index: {}]  }
   0x1   :  { %11 = vsyncpa [#allocation6], 0 }
   0x2   :  { %12 = vsyncpa [#allocation4], 0  ;;  %s30_s20 = sshll.u32 %s1484_s1, 4  ;;  %s1179_s21 = smov [#allocation5]   ;;  %s31_s20 = int_to_ptr.hbm [resolvable:$true] %s30_s20 }
   0x3   :  { %s32_s22 = sshll.u32 %s1179_s21, 4  ;;  %s17_s25 = sshll.u32 %s1483_s0, 4  ;;  %s33_s22 = int_to_ptr.vmem [resolvable:$true] %s32_s22  ;;  %s18_s25 = int_to_ptr.hbm [resolvable:$true] %s17_s25 }
   0x4   :  { %s1180_s26 = smov 64   ;;  %s1181_s27 = smov 4  }
   0x5   :  { %38 = dma.hbm_to_vmem [thread:$0]  %s31_s20, 2048, %s33_s22, [#allocation6], %s1180_s26, %s1180_s26, %s1181_s27  }
   0x6   :  { %s1182_s28 = smov [#allocation2]   ;;  %s45_s7 = sshll.u32 %s1486_s3, 4  ;;  %s46_s7 = int_to_ptr.hbm [resolvable:$true] %s45_s7 }
   0x7   :  { %s19_s29 = sshll.u32 %s1182_s28, 4  ;;  %s1183_s1 = smov [#allocation7]   ;;  %s20_s29 = int_to_ptr.vmem [resolvable:$true] %s19_s29 }
   0x8   :  { %25 = dma.hbm_to_vmem [thread:$0]  %s18_s25, 512, %s20_s29, [#allocation3], %s1180_s26, %s1180_s26, %s1181_s27  }
   0x9   :  { %s47_s8 = sshll.u32 %s1183_s1, 4  ;;  %s1184_s9 = smov 128   ;;  %s48_s8 = int_to_ptr.vmem [resolvable:$true] %s47_s8 }
   0xa   :  { %s1185_s10 = smov 8  }
   0xb   :  { %53 = dma.hbm_to_vmem [thread:$0]  %s46_s7, 2048, %s48_s8, [#allocation6], %s1184_s9, %s1184_s9, %s1185_s10  }
   0xc   :  { %1173 = dma.done.wait [#allocation3], 512  }
   0xd   :  { %1174 = vsyncadd [#allocation3], 4294966784 }
   0xe   :  { %1175 = dma.done.wait [#allocation6], 4096  }
   0xf   :  { %1176 = vsyncadd [#allocation6], 4294963200  ;;  %v1050_v0 = vld [vmem:[#allocation5 + $0x78] sm:$0xff]  ;;  %v1049_v2 = vld [vmem:[#allocation5 + $0x70] sm:$0xff]  ;;  %vm124_vm0 = vcmask 1040384   ;;  %vm129_vm1 = vcmask 1041409  }
  0x10   :  { %v1042_v1 = vld [vmem:[#allocation5 + $0x38] sm:$0xff]  ;;  %435 = vmatpush.bf16.msra.mxu0 %v1050_v0  ;;  %1051 = vmatpush.bf16.msra.mxu3 %v1050_v0  ;;  %v1041_v3 = vld [vmem:[#allocation5 + $0x30] sm:$0xff]  ;;  %v68_v4 = vld [vmem:[#allocation2] sm:$0xf]  ;;  %vm133_vm2 = vcmask 1042434   ;;  %vm137_vm3 = vcmask 1043459  }
  0x11   :  { %618 = vmatpush.bf16.msra.mxu1 %v1042_v1  ;;  %1059 = vmatpush.bf16.msra.mxu2 %v1042_v1  ;;  %v69_v5 = vld [vmem:[#allocation2 + $0x4] sm:$0xf]  ;;  %v1226_v6 = vld [vmem:[#allocation2 + $0x8] sm:$0xf]  ;;  %v116_v7 = vrot.slane %v68_v4, 3  ;;  %v1046_v40 = vld [vmem:[#allocation5 + $0x58] sm:$0xff] }
  0x12   :  { %v1048_v8 = vld [vmem:[#allocation5 + $0x68] sm:$0xff]  ;;  %v117_v9 = vrot.slane %v69_v5, 3  ;;  %v1229_v10 = vrot.slane %v1226_v6, 3  ;;  %v1047_v23 = vld [vmem:[#allocation5 + $0x60] sm:$0xff]  ;;  %v1281_v42 = vld [vmem:[#allocation2 + $0x10] sm:$0xf] }
  0x13   :  { %v1040_v11 = vld [vmem:[#allocation5 + $0x28] sm:$0xff]  ;;  %v1232_v12 = vsel %vm124_vm0, %v68_v4, %v116_v7  ;;  %v130_v13 = vsel %vm129_vm1, %v68_v4, %v116_v7  ;;  %v134_v14 = vsel %vm133_vm2, %v68_v4, %v116_v7  ;;  %v138_v17 = vsel %vm137_vm3, %v68_v4, %v116_v7  ;;  %v1039_v28 = vld [vmem:[#allocation5 + $0x20] sm:$0xff]  ;;  %v1038_v43 = vld [vmem:[#allocation5 + $0x18] sm:$0xff]  ;;  %s1186_s12 = smov [#allocation8]   ;;  %s932_s16 = sshll.u32 %s1488_s5, 4  ;;  %s933_s16 = int_to_ptr.hbm [resolvable:$true] %s932_s16 }
  0x14   :  { %436 = vmatpush.bf16.msra.mxu0 %v1049_v2  ;;  %1052 = vmatpush.bf16.msra.mxu3 %v1049_v2  ;;  %v1236_v15 = vrot.slane %v130_v13, 1  ;;  %v1238_v16 = vrot.slane %v134_v14, 2  ;;  %v1242_v18 = vsel %vm124_vm0, %v69_v5, %v117_v9  ;;  %v1244_v19 = vrot.slane %v138_v17, 3  ;;  %v71_v45 = vld [vmem:[#allocation2 + $0xc] sm:$0xf]  ;;  %v1045_v47 = vld [vmem:[#allocation5 + $0x50] sm:$0xff] }
  0x15   :  { %619 = vmatpush.bf16.msra.mxu1 %v1041_v3  ;;  %1060 = vmatpush.bf16.msra.mxu2 %v1041_v3  ;;  %v145_v20 = vsel %vm129_vm1, %v69_v5, %v117_v9  ;;  %v148_v21 = vsel %vm133_vm2, %v69_v5, %v117_v9  ;;  %v1249_v22 = vsel %vm137_vm3, %v69_v5, %v117_v9  ;;  %v232_v30 = vunpack.i.h.s16 %v1232_v12  ;;  %v1037_v49 = vld [vmem:[#allocation5 + $0x10] sm:$0xff]  ;;  %v1044_v55 = vld [vmem:[#allocation5 + $0x48] sm:$0xff]  ;;  %v1043_v4 = vld [vmem:[#allocation5 + $0x40] sm:$0xff]  ;;  %s930_s13 = sshll.u32 %s1186_s12, 4  ;;  %s931_s13 = int_to_ptr.vmem [resolvable:$true] %s930_s13 }
  0x16   :  { %v1251_v24 = vrot.slane %v145_v20, 1  ;;  %v1253_v25 = vrot.slane %v148_v21, 2  ;;  %v153_v26 = vrot.slane %v1249_v22, 3  ;;  %v1259_v27 = vsel %vm124_vm0, %v1226_v6, %v1229_v10  ;;  %v1036_v59 = vld [vmem:[#allocation5 + $0x8] sm:$0xff]  ;;  %v1035_v9 = vld [vmem:[#allocation5] sm:$0xff] }
  0x17   :  { %v158_v29 = vsel %vm129_vm1, %v1226_v6, %v1229_v10  ;;  %v234_v31 = vunpack.i.h.s16 %v1236_v15  ;;  %v236_v32 = vunpack.i.h.s16 %v1238_v16  ;;  %v238_v34 = vunpack.i.h.s16 %v1244_v19  ;;  %v74_v13 = vld [vmem:[#allocation2 + $0x18] sm:$0xf] }
  0x18   :  { %437 = vmatpush.bf16.msra.mxu0 %v1048_v8  ;;  %1053 = vmatpush.bf16.msra.mxu3 %v1048_v8  ;;  %v1267_v33 = vrot.slane %v158_v29, 1  ;;  %v239_v35 = vunpack.i.h.s16 %v1242_v18  ;;  %v246_v36 = vunpack.i.h.s16 %v1259_v27  ;;  %329 = vst [vmem:[#allocation1 + $0x4] ss:$9 sm:$0xff] %v1251_v24  ;;  %v943_v37 = vpack.i.b16 %v1236_v15, %v232_v30 }
  0x19   :  { %620 = vmatpush.bf16.msra.mxu1 %v1040_v11  ;;  %1061 = vmatpush.bf16.msra.mxu2 %v1040_v11  ;;  %v944_v38 = vpack.i.b16 %v1238_v16, %v234_v31  ;;  %v945_v39 = vpack.i.b16 %v1244_v19, %v236_v32  ;;  %332 = vst [vmem:[#allocation1 + $0x5] ss:$9 sm:$0xff] %v1253_v25  ;;  %v120_v46 = vrot.slane %v1281_v42, 3  ;;  %v119_v48 = vrot.slane %v71_v45, 3 }
  0x1a   :  { %v291_v41 = vpack.i.b16 %v239_v35, %v238_v34  ;;  %335 = vst [vmem:[#allocation1 + $0x6] ss:$9 sm:$0xff] %v153_v26  ;;  %v946_v44 = vpack.i.b16 %v1267_v33, %v246_v36  ;;  %v161_v50 = vsel %vm133_vm2, %v1226_v6, %v1229_v10  ;;  %v164_v51 = vsel %vm137_vm3, %v1226_v6, %v1229_v10  ;;  %v73_v10 = vld [vmem:[#allocation2 + $0x14] sm:$0xf] }
  0x1b   :  { %317 = vst [vmem:[#allocation1] ss:$9 sm:$0xff] %v943_v37  ;;  %v171_v52 = vsel %vm129_vm1, %v71_v45, %v119_v48  ;;  %v174_v53 = vsel %vm133_vm2, %v71_v45, %v119_v48  ;;  %v184_v54 = vsel %vm129_vm1, %v1281_v42, %v120_v46  ;;  %v1295_v56 = vrot.slane %v161_v50, 2 }
  0x1c   :  { %438 = vmatpush.bf16.msra.mxu0 %v1047_v23  ;;  %1054 = vmatpush.bf16.msra.mxu3 %v1047_v23  ;;  %320 = vst [vmem:[#allocation1 + $0x1] ss:$9 sm:$0xff] %v944_v38  ;;  %v1297_v57 = vrot.slane %v164_v51, 3  ;;  %v1300_v58 = vsel %vm137_vm3, %v71_v45, %v119_v48  ;;  %v1303_v60 = vsel %vm124_vm0, %v71_v45, %v119_v48  ;;  %v1305_v61 = vrot.slane %v171_v52, 1 }
  0x1d   :  { %621 = vmatpush.bf16.msra.mxu1 %v1039_v28  ;;  %1062 = vmatpush.bf16.msra.mxu2 %v1039_v28  ;;  %323 = vst [vmem:[#allocation1 + $0x2] ss:$9 sm:$0xff] %v945_v39  ;;  %v1307_v62 = vrot.slane %v174_v53, 2  ;;  %v1311_v63 = vsel %vm124_vm0, %v1281_v42, %v120_v46  ;;  %v1313_v0 = vrot.slane %v184_v54, 1  ;;  %v179_v1 = vrot.slane %v1300_v58, 3 }
  0x1e   :  { %326 = vst [vmem:[#allocation1 + $0x3] ss:$9 sm:$0xff] %v291_v41  ;;  %v187_v2 = vsel %vm133_vm2, %v1281_v42, %v120_v46  ;;  %v248_v3 = vunpack.i.h.s16 %v1267_v33  ;;  %v250_v6 = vunpack.i.h.s16 %v1295_v56  ;;  %v252_v7 = vunpack.i.h.s16 %v1297_v57 }
  0x1f   :  { %338 = vst [vmem:[#allocation1 + $0x7] ss:$9 sm:$0xff] %v946_v44  ;;  %v253_v8 = vunpack.i.h.s16 %v1303_v60  ;;  %v260_v11 = vunpack.i.h.s16 %v1311_v63  ;;  %v1324_v14 = vrot.slane %v187_v2, 2  ;;  %v262_v17 = vunpack.i.h.s16 %v1313_v0 }
  0x20   :  { %439 = vmatpush.bf16.msra.mxu0 %v1046_v40  ;;  %1055 = vmatpush.bf16.msra.mxu3 %v1046_v40  ;;  %v947_v20 = vpack.i.b16 %v1295_v56, %v248_v3  ;;  %v948_v21 = vpack.i.b16 %v1297_v57, %v250_v6  ;;  %v121_v23 = vrot.slane %v73_v10, 3  ;;  %v190_v28 = vsel %vm137_vm3, %v1281_v42, %v120_v46 }
  0x21   :  { %622 = vmatpush.bf16.msra.mxu1 %v1038_v43  ;;  %1063 = vmatpush.bf16.msra.mxu2 %v1038_v43  ;;  %v298_v29 = vpack.i.b16 %v253_v8, %v252_v7  ;;  %v122_v30 = vrot.slane %v74_v13, 3  ;;  %v949_v31 = vpack.i.b16 %v1313_v0, %v260_v11  ;;  %v950_v32 = vpack.i.b16 %v1324_v14, %v262_v17 }
  0x22   :  { %v1338_v34 = vrot.slane %v190_v28, 3  ;;  %v1341_v36 = vsel %vm124_vm0, %v73_v10, %v121_v23  ;;  %v264_v39 = vunpack.i.h.s16 %v1324_v14  ;;  %v197_v44 = vsel %vm129_vm1, %v73_v10, %v121_v23 }
  0x23   :  { %v210_v37 = vsel %vm129_vm1, %v74_v13, %v122_v30  ;;  %v213_v38 = vsel %vm133_vm2, %v74_v13, %v122_v30  ;;  %v267_v41 = vunpack.i.h.s16 %v1341_v36  ;;  %v1349_v42 = vsel %vm124_vm0, %v74_v13, %v122_v30 }
  0x24   :  { %440 = vmatpush.bf16.msra.mxu0 %v1045_v47  ;;  %1056 = vmatpush.bf16.msra.mxu3 %v1045_v47  ;;  %v266_v40 = vunpack.i.h.s16 %v1338_v34  ;;  %v1351_v43 = vrot.slane %v210_v37, 1  ;;  %v1354_v45 = vrot.slane %v213_v38, 2  ;;  %v200_v46 = vsel %vm133_vm2, %v73_v10, %v121_v23 }
  0x25   :  { %623 = vmatpush.bf16.msra.mxu1 %v1037_v49  ;;  %1064 = vmatpush.bf16.msra.mxu2 %v1037_v49  ;;  %v216_v47 = vsel %vm137_vm3, %v74_v13, %v122_v30  ;;  %v951_v48 = vpack.i.b16 %v1338_v34, %v264_v39  ;;  %v75_v49 = vld [vmem:[#allocation2 + $0x1c] sm:$0xf]  ;;  %v1360_v50 = vsel %vm137_vm3, %v73_v10, %v121_v23  ;;  %v274_v51 = vunpack.i.h.s16 %v1349_v42 }
  0x26   :  { %v339_v5 = vld [vmem:[#allocation1] sm:$0xff]  ;;  %v305_v52 = vpack.i.b16 %v267_v41, %v266_v40  ;;  %v1365_v53 = vrot.slane %v197_v44, 1  ;;  %v276_v54 = vunpack.i.h.s16 %v1351_v43  ;;  %v278_v2 = vunpack.i.h.s16 %v1354_v45 }
  0x27   :  { %347 = vst [vmem:[#allocation1 + $0x3] ss:$9 sm:$0xff] %v1305_v61  ;;  %v952_v6 = vpack.i.b16 %v1351_v43, %v274_v51  ;;  %v243_v37 = vunpack.i.h.s16 %v1253_v25  ;;  %v987_v39 = vpack.i.b16 %v1242_v18, %v1244_v19  ;;  %v988_v40 = vpack.i.b16 %v1251_v24, %v239_v35 }
  0x28   :  { %441 = vmatpush.bf16.msra.mxu0 %v1044_v55  ;;  %1057 = vmatpush.bf16.msra.mxu3 %v1044_v55  ;;  %349 = vst [vmem:[#allocation1 + $0x4] ss:$9 sm:$0xff] %v1307_v62  ;;  %v1368_v55 = vrot.slane %v200_v46, 2  ;;  %v953_v7 = vpack.i.b16 %v1354_v45, %v276_v54  ;;  %v255_v18 = vunpack.i.h.s16 %v1305_v61  ;;  %v996_v35 = vpack.i.b16 %v1365_v53, %v267_v41 }
  0x29   :  { %624 = vmatpush.bf16.msra.mxu1 %v1036_v59  ;;  %1065 = vmatpush.bf16.msra.mxu2 %v1036_v59  ;;  %351 = vst [vmem:[#allocation1 + $0x5] ss:$9 sm:$0xff] %v179_v1  ;;  %v1370_v59 = vrot.slane %v216_v47, 3  ;;  %v990_v46 = vpack.i.b16 %v153_v26, %v243_v37  ;;  %vm780_vm4 = vcmask 1046528   ;;  %vm892_vm5 = vcmask 1044484  }
  0x2a   :  { %341 = vst [vmem:[#allocation1] ss:$9 sm:$0xff] %v947_v20  ;;  %v993_v22 = vpack.i.b16 %v1307_v62, %v255_v18  ;;  %vm895_vm6 = vcmask 1045509   ;;  %vm898_vm7 = vcmask 1046534   ;;  %vm901_vm8 = vcmask 1047559  }
  0x2b   :  { %343 = vst [vmem:[#allocation1 + $0x1] ss:$9 sm:$0xff] %v948_v21  ;;  %v280_v11 = vunpack.i.h.s16 %v1370_v59 }
  0x2c   :  { %442 = vmatpush.bf16.msra.mxu0 %v1043_v4  ;;  %1058 = vmatpush.bf16.msra.mxu3 %v1043_v4  ;;  %345 = vst [vmem:[#allocation1 + $0x2] ss:$9 sm:$0xff] %v298_v29  ;;  %v123_v4 = vrot.slane %v75_v49, 3 }
  0x2d   :  { %625 = vmatpush.bf16.msra.mxu1 %v1035_v9  ;;  %1066 = vmatpush.bf16.msra.mxu2 %v1035_v9  ;;  %353 = vst [vmem:[#allocation1 + $0x6] ss:$9 sm:$0xff] %v949_v31  ;;  %v954_v9 = vpack.i.b16 %v1370_v59, %v278_v2 }
  0x2e   :  { %355 = vst [vmem:[#allocation1 + $0x7] ss:$9 sm:$0xff] %v950_v32  ;;  %v1380_v10 = vsel %vm124_vm0, %v75_v49, %v123_v4  ;;  %v223_v17 = vsel %vm129_vm1, %v75_v49, %v123_v4  ;;  %v226_v20 = vsel %vm133_vm2, %v75_v49, %v123_v4  ;;  %v1389_v21 = vsel %vm137_vm3, %v75_v49, %v123_v4 }
  0x2f   :  { %443 = vmatmul.bf16.vlgmr.msra.gmra.mxu0 %v339_v5  ;;  %v205_v5 = vrot.slane %v1360_v50, 3  ;;  %v281_v13 = vunpack.i.h.s16 %v1380_v10  ;;  %v225_v28 = vrot.slane %v223_v17, 1  ;;  %v1393_v29 = vrot.slane %v226_v20, 2 }
  0x30   :  { %v231_v30 = vrot.slane %v1389_v21, 3  ;;  %v241_v32 = vunpack.i.h.s16 %v1251_v24 }
  0x31   :  { %v312_v23 = vpack.i.b16 %v281_v13, %v280_v11  ;;  %v283_v58 = vunpack.i.h.s16 %v225_v28 }
  0x32   :  { %v989_v44 = vpack.i.b16 %v1253_v25, %v241_v32  ;;  %v269_v25 = vunpack.i.h.s16 %v1365_v53  ;;  %v870_v32 = vld [vmem:[#allocation7 + $0x68] sm:$0xff] }
  0x35   :  { %v356_v3 = vld [vmem:[#allocation1] sm:$0xff] }
  0x36   :  { %358 = vst [vmem:[#allocation1] ss:$9 sm:$0xff] %v951_v48  ;;  %448 = vmatmul.bf16.vlgmr.msra.gmra.mxu3 %v356_v3 }
  0x37   :  { %360 = vst [vmem:[#allocation1 + $0x1] ss:$9 sm:$0xff] %v305_v52 }
  0x38   :  { %362 = vst [vmem:[#allocation1 + $0x2] ss:$9 sm:$0xff] %v1365_v53 }
  0x39   :  { %364 = vst [vmem:[#allocation1 + $0x3] ss:$9 sm:$0xff] %v1368_v55 }
  0x3a   :  { %366 = vst [vmem:[#allocation1 + $0x4] ss:$9 sm:$0xff] %v205_v5 }
  0x3b   :  { %368 = vst [vmem:[#allocation1 + $0x5] ss:$9 sm:$0xff] %v952_v6 }
  0x3c   :  { %370 = vst [vmem:[#allocation1 + $0x6] ss:$9 sm:$0xff] %v953_v7 }
  0x3d   :  { %372 = vst [vmem:[#allocation1 + $0x7] ss:$9 sm:$0xff] %v954_v9 }
  0x44   :  { %v373_v31 = vld [vmem:[#allocation1] sm:$0xff] }
  0x45   :  { %375 = vst [vmem:[#allocation1] ss:$9 sm:$0xff] %v312_v23 }
  0x46   :  { %377 = vst [vmem:[#allocation1 + $0x1] ss:$9 sm:$0xff] %v225_v28  ;;  %453 = vmatmul.bf16.gmra.mxu3 %v373_v31 }
  0x47   :  { %379 = vst [vmem:[#allocation1 + $0x2] ss:$9 sm:$0xff] %v1393_v29 }
  0x48   :  { %381 = vst [vmem:[#allocation1 + $0x3] ss:$9 sm:$0xff] %v231_v30 }
  0x4f   :  { %v382_v38 = vld [vmem:[#allocation1] sm:$0xff] }
  0x50   :  { %500 = vst [vmem:[#allocation1] ss:$9 sm:$0xff] %v1232_v12  ;;  %v257_v12 = vunpack.i.h.s16 %v1307_v62  ;;  %v1000_v62 = vpack.i.b16 %v225_v28, %v281_v13 }
  0x51   :  { %503 = vst [vmem:[#allocation1 + $0x1] ss:$9 sm:$0xff] %v1236_v15  ;;  %v991_v15 = vpack.i.b16 %v1303_v60, %v1297_v57  ;;  %v285_v60 = vunpack.i.h.s16 %v1393_v29 }
  0x52   :  { %506 = vst [vmem:[#allocation1 + $0x2] ss:$9 sm:$0xff] %v1238_v16  ;;  %v992_v16 = vpack.i.b16 %v1305_v61, %v253_v8  ;;  %v994_v24 = vpack.i.b16 %v179_v1, %v257_v12  ;;  %v999_v61 = vpack.i.b16 %v1380_v10, %v1370_v59  ;;  %v866_v12 = vld [vmem:[#allocation7 + $0x48] sm:$0xff] }
  0x53   :  { %509 = vst [vmem:[#allocation1 + $0x3] ss:$9 sm:$0xff] %v987_v39  ;;  %v1002_v1 = vpack.i.b16 %v231_v30, %v285_v60  ;;  %v871_v30 = vld [vmem:[#allocation7 + $0x70] sm:$0xff]  ;;  %v861_v60 = vld [vmem:[#allocation7 + $0x20] sm:$0xff] }
  0x54   :  { %512 = vst [vmem:[#allocation1 + $0x4] ss:$9 sm:$0xff] %v988_v40  ;;  %v868_v40 = vld [vmem:[#allocation7 + $0x58] sm:$0xff] }
  0x55   :  { %515 = vst [vmem:[#allocation1 + $0x5] ss:$9 sm:$0xff] %v989_v44 }
  0x56   :  { %518 = vst [vmem:[#allocation1 + $0x6] ss:$9 sm:$0xff] %v990_v46  ;;  %458 = vmatmul.bf16.gmra.mxu3 %v382_v38  ;;  %v869_v38 = vld [vmem:[#allocation7 + $0x60] sm:$0xff]  ;;  %v867_v46 = vld [vmem:[#allocation7 + $0x50] sm:$0xff] }
  0x57   :  { %521 = vst [vmem:[#allocation1 + $0x7] ss:$9 sm:$0xff] %v1259_v27  ;;  %v271_v27 = vunpack.i.h.s16 %v1368_v55 }
  0x59   :  { %v998_v57 = vpack.i.b16 %v205_v5, %v271_v27 }
  0x5e   :  { %v522_v19 = vld [vmem:[#allocation1] sm:$0xff] }
  0x5f   :  { %626 = vmatmul.bf16.vlgmr.msra.gmra.mxu1 %v522_v19  ;;  %524 = vst [vmem:[#allocation1] ss:$9 sm:$0xff] %v1267_v33  ;;  %v995_v33 = vpack.i.b16 %v1341_v36, %v1338_v34 }
  0x60   :  { %526 = vst [vmem:[#allocation1 + $0x1] ss:$9 sm:$0xff] %v1295_v56  ;;  %v997_v56 = vpack.i.b16 %v1368_v55, %v269_v25 }
  0x61   :  { %536 = vst [vmem:[#allocation1 + $0x6] ss:$9 sm:$0xff] %v1311_v63  ;;  %v1001_v63 = vpack.i.b16 %v1393_v29, %v283_v58  ;;  %v872_v29 = vld [vmem:[#allocation7 + $0x78] sm:$0xff]  ;;  %v862_v58 = vld [vmem:[#allocation7 + $0x28] sm:$0xff] }
  0x62   :  { %538 = vst [vmem:[#allocation1 + $0x7] ss:$9 sm:$0xff] %v1313_v0  ;;  %904 = vmatpush.msrb.mxu2 %v872_v29 }
  0x63   :  { %528 = vst [vmem:[#allocation1 + $0x2] ss:$9 sm:$0xff] %v991_v15 }
  0x64   :  { %530 = vst [vmem:[#allocation1 + $0x3] ss:$9 sm:$0xff] %v992_v16  ;;  %905 = vmatpush.msrb.mxu2 %v871_v30 }
  0x65   :  { %532 = vst [vmem:[#allocation1 + $0x4] ss:$9 sm:$0xff] %v993_v22 }
  0x66   :  { %534 = vst [vmem:[#allocation1 + $0x5] ss:$9 sm:$0xff] %v994_v24  ;;  %906 = vmatpush.msrb.mxu2 %v870_v32 }
  0x68   :  { %907 = vmatpush.msrb.mxu2 %v869_v38 }
  0x6a   :  { %908 = vmatpush.msrb.mxu2 %v868_v40 }
  0x6c   :  { %909 = vmatpush.msrb.mxu2 %v867_v46 }
  0x6d   :  { %v539_v26 = vld [vmem:[#allocation1] sm:$0xff] }
  0x6e   :  { %541 = vst [vmem:[#allocation1] ss:$9 sm:$0xff] %v1324_v14  ;;  %910 = vmatpush.msrb.mxu2 %v866_v12 }
  0x6f   :  { %631 = vmatmul.bf16.gmra.mxu1 %v539_v26  ;;  %551 = vst [vmem:[#allocation1 + $0x5] ss:$9 sm:$0xff] %v1349_v42  ;;  %v865_v26 = vld [vmem:[#allocation7 + $0x40] sm:$0xff] }
  0x70   :  { %553 = vst [vmem:[#allocation1 + $0x6] ss:$9 sm:$0xff] %v1351_v43  ;;  %911 = vmatpush.msrb.mxu2 %v865_v26 }
  0x71   :  { %555 = vst [vmem:[#allocation1 + $0x7] ss:$9 sm:$0xff] %v1354_v45 }
  0x72   :  { %543 = vst [vmem:[#allocation1 + $0x1] ss:$9 sm:$0xff] %v995_v33 }
  0x73   :  { %545 = vst [vmem:[#allocation1 + $0x2] ss:$9 sm:$0xff] %v996_v35  ;;  %v864_v35 = vld [vmem:[#allocation7 + $0x38] sm:$0xff] }
  0x74   :  { %547 = vst [vmem:[#allocation1 + $0x3] ss:$9 sm:$0xff] %v997_v56  ;;  %v863_v56 = vld [vmem:[#allocation7 + $0x30] sm:$0xff]  ;;  %912 = vmatpush.msrb.mxu2 %v864_v35 }
  0x75   :  { %549 = vst [vmem:[#allocation1 + $0x4] ss:$9 sm:$0xff] %v998_v57 }
  0x76   :  { %913 = vmatpush.msrb.mxu2 %v863_v56 }
  0x78   :  { %914 = vmatpush.msrb.mxu2 %v862_v58 }
  0x7a   :  { %915 = vmatpush.msrb.mxu2 %v861_v60 }
  0x7c   :  { %v556_v0 = vld [vmem:[#allocation1] sm:$0xff] }
  0x7d   :  { %636 = vmatmul.bf16.vlgmr.msra.gmra.mxu2 %v556_v0  ;;  %558 = vst [vmem:[#allocation1] ss:$9 sm:$0xff] %v999_v61  ;;  %v860_v61 = vld [vmem:[#allocation7 + $0x18] sm:$0xff]  ;;  %v859_v0 = vld [vmem:[#allocation7 + $0x10] sm:$0xff] }
  0x7e   :  { %560 = vst [vmem:[#allocation1 + $0x1] ss:$9 sm:$0xff] %v1000_v62  ;;  %916 = vmatpush.msrb.mxu2 %v860_v61 }
  0x7f   :  { %562 = vst [vmem:[#allocation1 + $0x2] ss:$9 sm:$0xff] %v1001_v63 }
  0x80   :  { %564 = vst [vmem:[#allocation1 + $0x3] ss:$9 sm:$0xff] %v1002_v1  ;;  %917 = vmatpush.msrb.mxu2 %v859_v0 }
  0x87   :  { %v565_v8 = vld [vmem:[#allocation1] sm:$0xff] }
  0x8d   :  { %641 = vmatmul.bf16.gmra.mxu2 %v565_v8 }
  0xac   :  { %v444_v34 = vpop.f32.mrf.mxu0 }
  0xb4   :  { %v446_v52 = vpop.f32.mrf.mxu0 }
  0xb9   :  { %v449_v14 = vpop.f32.mrf.mxu3 }
  0xc1   :  { %v451_v51 = vpop.f32.mrf.mxu3 }
  0xc9   :  { %v1447_v5 = vpop.f32.mrf.mxu3 }
  0xd1   :  { %v1449_v10 = vpop.f32.mrf.mxu3 }
  0xd9   :  { %v1453_v37 = vpop.f32.mrf.mxu3 }
  0xdc   :  { %v627_v36 = vpop.f32.mrf.mxu1 }
  0xdd   :  { %v628_v41 = vadd.f32 %v627_v36, %v444_v34  ;;  %v858_v36 = vld [vmem:[#allocation7 + $0x8] sm:$0xff] }
  0xde   :  { %918 = vmatpush.msrb.mxu2 %v858_v36 }
  0xdf   :  { %v653_v42 = vrot.slane %v628_v41, 1  ;;  %v654_v43 = vrot.slane %v628_v41, 2  ;;  %v655_v45 = vrot.slane %v628_v41, 3  ;;  %702 = vst [vmem:[#allocation1] ss:$9 sm:$0xff] %v628_v41  ;;  %v656_v47 = vrot.slane %v628_v41, 4 }
  0xe0   :  { %v657_v48 = vrot.slane %v628_v41, 5  ;;  %v658_v49 = vrot.slane %v628_v41, 6  ;;  %v659_v54 = vrot.slane %v628_v41, 7 }
  0xe1   :  { %704 = vst [vmem:[#allocation1 + $0x1] ss:$9 sm:$0xff] %v653_v42  ;;  %v461_v22 = vpop.f32.mrf.mxu3 }
  0xe2   :  { %706 = vst [vmem:[#allocation1 + $0x2] ss:$9 sm:$0xff] %v654_v43 }
  0xe3   :  { %708 = vst [vmem:[#allocation1 + $0x3] ss:$9 sm:$0xff] %v655_v45  ;;  %v857_v45 = vld [vmem:[#allocation7] sm:$0xff] }
  0xe4   :  { %710 = vst [vmem:[#allocation1 + $0x4] ss:$9 sm:$0xff] %v656_v47  ;;  %v629_v50 = vpop.f32.mrf.mxu1  ;;  %919 = vmatpush.msrb.mxu2 %v857_v45 }
  0xe5   :  { %712 = vst [vmem:[#allocation1 + $0x5] ss:$9 sm:$0xff] %v657_v48  ;;  %v630_v53 = vadd.f32 %v629_v50, %v446_v52 }
  0xe6   :  { %714 = vst [vmem:[#allocation1 + $0x6] ss:$9 sm:$0xff] %v658_v49 }
  0xe7   :  { %v660_v55 = vrot.slane %v630_v53, 1  ;;  %v661_v2 = vrot.slane %v630_v53, 2  ;;  %v662_v3 = vrot.slane %v630_v53, 3  ;;  %v663_v4 = vrot.slane %v630_v53, 4 }
  0xe8   :  { %v664_v6 = vrot.slane %v630_v53, 5  ;;  %v665_v11 = vrot.slane %v630_v53, 6  ;;  %v666_v13 = vrot.slane %v630_v53, 7 }
  0xec   :  { %v632_v7 = vpop.f32.mrf.mxu1 }
  0xed   :  { %v1445_v59 = vld [vmem:[#allocation1] sm:$0xff]  ;;  %v633_v9 = vadd.f32 %v632_v7, %v449_v14 }
  0xee   :  { %716 = vst [vmem:[#allocation1] ss:$9 sm:$0xff] %v659_v54 }
  0xef   :  { %717 = vst [vmem:[#allocation1 + $0x1] ss:$9 sm:$0xff] %v630_v53  ;;  %v667_v20 = vrot.slane %v633_v9, 1  ;;  %v668_v21 = vrot.slane %v633_v9, 2  ;;  %v669_v23 = vrot.slane %v633_v9, 3  ;;  %v670_v28 = vrot.slane %v633_v9, 4 }
  0xf0   :  { %718 = vst [vmem:[#allocation1 + $0x2] ss:$9 sm:$0xff] %v660_v55  ;;  %v671_v18 = vrot.slane %v633_v9, 5  ;;  %v672_v15 = vrot.slane %v633_v9, 6  ;;  %v673_v24 = vrot.slane %v633_v9, 7 }
  0xf1   :  { %719 = vst [vmem:[#allocation1 + $0x3] ss:$9 sm:$0xff] %v661_v2 }
  0xf2   :  { %720 = vst [vmem:[#allocation1 + $0x4] ss:$9 sm:$0xff] %v662_v3 }
  0xf3   :  { %721 = vst [vmem:[#allocation1 + $0x5] ss:$9 sm:$0xff] %v663_v4 }
  0xf4   :  { %722 = vst [vmem:[#allocation1 + $0x6] ss:$9 sm:$0xff] %v664_v6  ;;  %v634_v39 = vpop.f32.mrf.mxu1 }
  0xf5   :  { %v635_v44 = vadd.f32 %v634_v39, %v451_v51 }
  0xf7   :  { %v674_v25 = vrot.slane %v635_v44, 1  ;;  %v675_v27 = vrot.slane %v635_v44, 2  ;;  %v676_v33 = vrot.slane %v635_v44, 3  ;;  %v677_v63 = vrot.slane %v635_v44, 4 }
  0xf8   :  { %v678_v1 = vrot.slane %v635_v44, 5  ;;  %v679_v14 = vrot.slane %v635_v44, 6  ;;  %v680_v41 = vrot.slane %v635_v44, 7 }
  0xfb   :  { %v1451_v17 = vld [vmem:[#allocation1] sm:$0xff] }
  0xfc   :  { %724 = vst [vmem:[#allocation1] ss:$9 sm:$0xff] %v665_v11 }
  0xfd   :  { %725 = vst [vmem:[#allocation1 + $0x1] ss:$9 sm:$0xff] %v666_v13 }
  0xfe   :  { %726 = vst [vmem:[#allocation1 + $0x2] ss:$9 sm:$0xff] %v633_v9  ;;  %v788_v9 = vsel %vm780_vm4, %v1451_v17, -inf  ;;  %v781_v17 = vsel %vm780_vm4, %v1445_v59, -inf }
  0xff   :  { %727 = vst [vmem:[#allocation1 + $0x3] ss:$9 sm:$0xff] %v667_v20  ;;  %v789_v20 = vrot.slane %v788_v9, 4  ;;  %v782_v38 = vrot.slane %v781_v17, 4 }
 0x100   :  { %728 = vst [vmem:[#allocation1 + $0x4] ss:$9 sm:$0xff] %v668_v21  ;;  %v637_v31 = vpop.f32.mrf.mxu2 }
 0x101   :  { %729 = vst [vmem:[#allocation1 + $0x5] ss:$9 sm:$0xff] %v669_v23  ;;  %v638_v62 = vadd.f32 %v637_v31, %v1447_v5  ;;  %v790_v31 = vmax.f32 %v788_v9, %v789_v20  ;;  %v783_v59 = vmax.f32 %v781_v17, %v782_v38 }
 0x102   :  { %730 = vst [vmem:[#allocation1 + $0x6] ss:$9 sm:$0xff] %v670_v28 }
 0x103   :  { %v681_v42 = vrot.slane %v638_v62, 1  ;;  %v682_v43 = vrot.slane %v638_v62, 2  ;;  %v683_v47 = vrot.slane %v638_v62, 3  ;;  %v684_v48 = vrot.slane %v638_v62, 4 }
 0x104   :  { %v685_v50 = vrot.slane %v638_v62, 5  ;;  %v686_v52 = vrot.slane %v638_v62, 6  ;;  %v687_v53 = vrot.slane %v638_v62, 7 }
 0x108   :  { %v639_v19 = vpop.f32.mrf.mxu2 }
 0x109   :  { %v1455_v16 = vld [vmem:[#allocation1] sm:$0xff]  ;;  %v640_v51 = vadd.f32 %v639_v19, %v1449_v10  ;;  %v791_v19 = vrot.slane %v790_v31, 2 }
 0x10a   :  { %732 = vst [vmem:[#allocation1] ss:$9 sm:$0xff] %v671_v18  ;;  %v795_v11 = vsel %vm780_vm4, %v1455_v16, -inf }
 0x10b   :  { %733 = vst [vmem:[#allocation1 + $0x1] ss:$9 sm:$0xff] %v672_v15  ;;  %v688_v54 = vrot.slane %v640_v51, 1  ;;  %v689_v55 = vrot.slane %v640_v51, 2  ;;  %v690_v2 = vrot.slane %v640_v51, 3  ;;  %v691_v4 = vrot.slane %v640_v51, 4 }
 0x10c   :  { %734 = vst [vmem:[#allocation1 + $0x2] ss:$9 sm:$0xff] %v673_v24  ;;  %v692_v5 = vrot.slane %v640_v51, 5  ;;  %v693_v6 = vrot.slane %v640_v51, 6  ;;  %v694_v10 = vrot.slane %v640_v51, 7  ;;  %v796_v23 = vrot.slane %v795_v11, 4 }
 0x10d   :  { %735 = vst [vmem:[#allocation1 + $0x3] ss:$9 sm:$0xff] %v635_v44  ;;  %v792_v56 = vmax.f32 %v790_v31, %v791_v19 }
 0x10e   :  { %736 = vst [vmem:[#allocation1 + $0x4] ss:$9 sm:$0xff] %v674_v25 }
 0x10f   :  { %737 = vst [vmem:[#allocation1 + $0x5] ss:$9 sm:$0xff] %v675_v27 }
 0x110   :  { %738 = vst [vmem:[#allocation1 + $0x6] ss:$9 sm:$0xff] %v676_v33  ;;  %v642_v57 = vpop.f32.mrf.mxu2 }
 0x111   :  { %v643_v7 = vadd.f32 %v642_v57, %v1453_v37  ;;  %v797_v37 = vmax.f32 %v795_v11, %v796_v23 }
 0x113   :  { %v695_v40 = vrot.slane %v643_v7, 1  ;;  %v696_v46 = vrot.slane %v643_v7, 2  ;;  %v697_v15 = vrot.slane %v643_v7, 3  ;;  %v798_v16 = vrot.slane %v797_v37, 2 }
 0x114   :  { %v698_v24 = vrot.slane %v643_v7, 4  ;;  %v699_v27 = vrot.slane %v643_v7, 5  ;;  %v700_v35 = vrot.slane %v643_v7, 6  ;;  %v701_v60 = vrot.slane %v643_v7, 7 }
 0x115   :  { %v799_v61 = vmax.f32 %v797_v37, %v798_v16 }
 0x117   :  { %v739_v8 = vld [vmem:[#allocation1] sm:$0xff] }
 0x118   :  { %740 = vst [vmem:[#allocation1] ss:$9 sm:$0xff] %v677_v63  ;;  %v644_v34 = vpop.f32.mrf.mxu2  ;;  %v802_v13 = vsel %vm780_vm4, %v739_v8, -inf  ;;  %v793_v8 = vrot.slane %v792_v56, 1 }
 0x119   :  { %741 = vst [vmem:[#allocation1 + $0x1] ss:$9 sm:$0xff] %v678_v1  ;;  %v803_v29 = vrot.slane %v802_v13, 4  ;;  %v800_v34 = vrot.slane %v799_v61, 1 }
 0x11a   :  { %742 = vst [vmem:[#allocation1 + $0x2] ss:$9 sm:$0xff] %v679_v14  ;;  %v794_v45 = vmax.f32 %v792_v56, %v793_v8 }
 0x11b   :  { %743 = vst [vmem:[#allocation1 + $0x3] ss:$9 sm:$0xff] %v680_v41  ;;  %v804_v39 = vmax.f32 %v802_v13, %v803_v29 }
 0x11c   :  { %744 = vst [vmem:[#allocation1 + $0x4] ss:$9 sm:$0xff] %v638_v62  ;;  %v784_v62 = vrot.slane %v783_v59, 2 }
 0x11d   :  { %745 = vst [vmem:[#allocation1 + $0x5] ss:$9 sm:$0xff] %v681_v42  ;;  %v805_v25 = vrot.slane %v804_v39, 2 }
 0x11e   :  { %746 = vst [vmem:[#allocation1 + $0x6] ss:$9 sm:$0xff] %v682_v43  ;;  %v785_v41 = vmax.f32 %v783_v59, %v784_v62 }
 0x11f   :  { %v806_v63 = vmax.f32 %v804_v39, %v805_v25 }
 0x121   :  { %v807_v42 = vrot.slane %v806_v63, 1 }
 0x125   :  { %v747_v49 = vld [vmem:[#allocation1] sm:$0xff] }
 0x126   :  { %748 = vst [vmem:[#allocation1] ss:$9 sm:$0xff] %v683_v47  ;;  %v809_v21 = vsel %vm780_vm4, %v747_v49, -inf }
 0x127   :  { %749 = vst [vmem:[#allocation1 + $0x1] ss:$9 sm:$0xff] %v684_v48  ;;  %v810_v30 = vrot.slane %v809_v21, 4  ;;  %v801_v48 = vmax.f32 %v799_v61, %v800_v34 }
 0x128   :  { %750 = vst [vmem:[#allocation1 + $0x2] ss:$9 sm:$0xff] %v685_v50 }
 0x129   :  { %751 = vst [vmem:[#allocation1 + $0x3] ss:$9 sm:$0xff] %v686_v52  ;;  %v811_v44 = vmax.f32 %v809_v21, %v810_v30  ;;  %v808_v52 = vmax.f32 %v806_v63, %v807_v42 }
 0x12a   :  { %752 = vst [vmem:[#allocation1 + $0x4] ss:$9 sm:$0xff] %v687_v53  ;;  %v1075_v53 = vld [vmem:[%s1485_s2] ss:$0 sm:$0xff] }
 0x12b   :  { %753 = vst [vmem:[#allocation1 + $0x5] ss:$9 sm:$0xff] %v640_v51  ;;  %v812_v33 = vrot.slane %v811_v44, 2  ;;  %v786_v51 = vrot.slane %v785_v41, 1 }
 0x12c   :  { %754 = vst [vmem:[#allocation1 + $0x6] ss:$9 sm:$0xff] %v688_v54 }
 0x12d   :  { %v813_v1 = vmax.f32 %v811_v44, %v812_v33 }
 0x12f   :  { %v814_v43 = vrot.slane %v813_v1, 1 }
 0x131   :  { %v815_v54 = vmax.f32 %v813_v1, %v814_v43 }
 0x133   :  { %v755_v3 = vld [vmem:[#allocation1] sm:$0xff]  ;;  %v845_v11 = vadd.f32 %v1075_v53, %v815_v54 }
 0x134   :  { %756 = vst [vmem:[#allocation1] ss:$9 sm:$0xff] %v689_v55  ;;  %v816_v28 = vsel %vm780_vm4, %v755_v3, -inf }
 0x135   :  { %757 = vst [vmem:[#allocation1 + $0x1] ss:$9 sm:$0xff] %v690_v2  ;;  %v817_v32 = vrot.slane %v816_v28, 4  ;;  %v853_v31 = vmax.f32 %v845_v11, 0.0 }
 0x136   :  { %758 = vst [vmem:[#allocation1 + $0x2] ss:$9 sm:$0xff] %v691_v4  ;;  %v842_v4 = vadd.f32 %v1075_v53, %v794_v45 }
 0x137   :  { %759 = vst [vmem:[#allocation1 + $0x3] ss:$9 sm:$0xff] %v692_v5  ;;  %v818_v12 = vmax.f32 %v816_v28, %v817_v32  ;;  %v891_v19 = vrot.slane %v853_v31, 4 }
 0x138   :  { %760 = vst [vmem:[#allocation1 + $0x4] ss:$9 sm:$0xff] %v693_v6  ;;  %v843_v6 = vadd.f32 %v1075_v53, %v801_v48  ;;  %v850_v21 = vmax.f32 %v842_v4, 0.0 }
 0x139   :  { %761 = vst [vmem:[#allocation1 + $0x5] ss:$9 sm:$0xff] %v694_v10  ;;  %v819_v57 = vrot.slane %v818_v12, 2  ;;  %v844_v10 = vadd.f32 %v1075_v53, %v808_v52 }
 0x13a   :  { %762 = vst [vmem:[#allocation1 + $0x6] ss:$9 sm:$0xff] %v643_v7  ;;  %v787_v7 = vmax.f32 %v785_v41, %v786_v51  ;;  %v851_v28 = vmax.f32 %v843_v6, 0.0  ;;  %v885_v38 = vrot.slane %v850_v21, 7 }
 0x13b   :  { %v820_v14 = vmax.f32 %v818_v12, %v819_v57  ;;  %v852_v30 = vmax.f32 %v844_v10, 0.0  ;;  %v1076_v57 = vld [vmem:[%s1487_s4] ss:$0 sm:$0xff] }
 0x13c   :  { %v841_v17 = vadd.f32 %v1075_v53, %v787_v7 }
 0x13d   :  { %v821_v47 = vrot.slane %v820_v14, 1 }
 0x13f   :  { %v822_v2 = vmax.f32 %v820_v14, %v821_v47 }
 0x141   :  { %v763_v18 = vld [vmem:[#allocation1] sm:$0xff]  ;;  %v846_v20 = vadd.f32 %v1075_v53, %v822_v2 }
 0x142   :  { %764 = vst [vmem:[#allocation1] ss:$9 sm:$0xff] %v695_v40  ;;  %v823_v22 = vsel %vm780_vm4, %v763_v18, -inf  ;;  %v887_v40 = vrot.slane %v851_v28, 6  ;;  %v889_v18 = vrot.slane %v852_v30, 5 }
 0x143   :  { %765 = vst [vmem:[#allocation1 + $0x1] ss:$9 sm:$0xff] %v696_v46  ;;  %v824_v26 = vrot.slane %v823_v22, 4  ;;  %v854_v37 = vmax.f32 %v846_v20, 0.0  ;;  %v849_v46 = vmax.f32 %v841_v17, 0.0 }
 0x144   :  { %766 = vst [vmem:[#allocation1 + $0x2] ss:$9 sm:$0xff] %v697_v15 }
 0x145   :  { %767 = vst [vmem:[#allocation1 + $0x3] ss:$9 sm:$0xff] %v698_v24  ;;  %v825_v58 = vmax.f32 %v823_v22, %v824_v26  ;;  %v886_v15 = vsel %vm129_vm1, %v885_v38, %v849_v46  ;;  %v894_v16 = vrot.slane %v854_v37, 3 }
 0x146   :  { %768 = vst [vmem:[#allocation1 + $0x4] ss:$9 sm:$0xff] %v699_v27  ;;  %v888_v22 = vsel %vm133_vm2, %v887_v40, %v886_v15 }
 0x147   :  { %769 = vst [vmem:[#allocation1 + $0x5] ss:$9 sm:$0xff] %v700_v35  ;;  %v826_v0 = vrot.slane %v825_v58, 2  ;;  %v890_v25 = vsel %vm137_vm3, %v889_v18, %v888_v22 }
 0x148   :  { %770 = vst [vmem:[#allocation1 + $0x6] ss:$9 sm:$0xff] %v701_v60  ;;  %v893_v26 = vsel %vm892_vm5, %v891_v19, %v890_v25 }
 0x149   :  { %v827_v36 = vmax.f32 %v825_v58, %v826_v0  ;;  %v896_v27 = vsel %vm895_vm6, %v894_v16, %v893_v26 }
 0x14b   :  { %v828_v49 = vrot.slane %v827_v36, 1 }
 0x14d   :  { %v829_v5 = vmax.f32 %v827_v36, %v828_v49 }
 0x14f   :  { %v771_v50 = vld [vmem:[#allocation1] sm:$0xff]  ;;  %v847_v23 = vadd.f32 %v1075_v53, %v829_v5 }
 0x150   :  { %v830_v55 = vsel %vm780_vm4, %v771_v50, -inf }
 0x151   :  { %v831_v3 = vrot.slane %v830_v55, 4  ;;  %v855_v39 = vmax.f32 %v847_v23, 0.0 }
 0x153   :  { %v832_v9 = vmax.f32 %v830_v55, %v831_v3  ;;  %v897_v24 = vrot.slane %v855_v39, 2 }
 0x155   :  { %v833_v13 = vrot.slane %v832_v9, 2  ;;  %v899_v35 = vsel %vm898_vm7, %v897_v24, %v896_v27 }
 0x157   :  { %v834_v29 = vmax.f32 %v832_v9, %v833_v13 }
 0x159   :  { %v835_v32 = vrot.slane %v834_v29, 1 }
 0x15b   :  { %v836_v44 = vmax.f32 %v834_v29, %v835_v32 }
 0x15d   :  { %v848_v12 = vadd.f32 %v1075_v53, %v836_v44 }
 0x15f   :  { %v856_v59 = vmax.f32 %v848_v12, 0.0 }
 0x161   :  { %v900_v33 = vrot.slane %v856_v59, 1 }
 0x163   :  { %v902_v56 = vsel %vm901_vm8, %v900_v33, %v899_v35 }
 0x164   :  { %920 = vmatmul.f32.vlgmr.msrb.gmra.mxu2 %v902_v56 }
 0x1e7   :  { %v921_v58 = vpop.f32.mrf.mxu2 }
 0x1e8   :  { %v922_v60 = vadd.f32 %v1076_v57, %v921_v58 }
 0x1ea   :  { %924 = vst [vmem:[#allocation8] sm:$0xff] %v922_v60 }
 0x1eb   :  { %935 = dma.vmem_to_hbm [thread:$0]  %s931_s13, 128, %s933_s16, [#allocation4]  }
 0x1ec   :  { %1177 = dma.done.wait [#allocation4], 128  }
 0x1ed   :  { %1178 = vsyncadd [#allocation4], 4294967168 }
 0x1ee   :  { %940 = vsyncpa [#allocation3], 1 }
 0x1ef   :  { %941 = vsyncpa [#allocation6], 1 }
 0x1f0   :  { %942 = vsyncpa [#allocation4], 1 }

</bundles_post_ra>
